<compile_context>
chip_gen: v5e
topology: v5e:2x2
jax: 0.10.0
libtpu: 0.0.40
codegen_flags: <defaults>
</compile_context>

<pallas_src>
import functools

import numpy as np
import jax
import jax.numpy as jnp
from jax.experimental import pallas as pl
from jax.experimental.pallas import tpu as pltpu


NUM_BINS = 31
(OP_IDENTITY, OP_SHEAR_X, OP_SHEAR_Y, OP_TRANSLATE_X, OP_TRANSLATE_Y, OP_ROTATE,
 OP_BRIGHTNESS, OP_COLOR, OP_CONTRAST, OP_SHARPNESS, OP_POSTERIZE, OP_SOLARIZE,
 OP_AUTOCONTRAST, OP_EQUALIZE) = range(14)
NUM_OPS = 14


def _augmentation_space(num_bins):
    """Static (NUM_OPS, num_bins) magnitude table + signed mask (TrivialAugmentWide)."""
    lin = lambda a, b: np.linspace(a, b, num_bins, dtype=np.float32)
    zeros = np.zeros((num_bins,), np.float32)
    table = np.stack([
        zeros,                                   # Identity
        lin(0.0, 0.99), lin(0.0, 0.99),          # ShearX, ShearY
        lin(0.0, 32.0), lin(0.0, 32.0),          # TranslateX, TranslateY
        lin(0.0, 135.0),                         # Rotate
        lin(0.0, 0.99), lin(0.0, 0.99),          # Brightness, Color
        lin(0.0, 0.99), lin(0.0, 0.99),          # Contrast, Sharpness
        (8.0 - np.round(np.arange(num_bins) / ((num_bins - 1) / 6.0))).astype(np.float32),
        lin(255.0, 0.0),                         # Solarize
        zeros, zeros,                            # AutoContrast, Equalize
    ])
    signed = np.array([False, True, True, True, True, True, True, True, True, True,
                       False, False, False, False])
    return table, signed


_MAG_TABLE_NP, _SIGNED_NP = _augmentation_space(NUM_BINS)


def _draw_ops(key, n):
    """Per-image TrivialAugmentWide draw.  Returns op codes (n,) int32 and per-image
    params (n, 8) float32:
      col 0: op code (exact small float)
      col 1: blend ratio (1 + signed magnitude)
      col 2: solarize threshold in [0, 1]
      col 3: posterize quantization step 2**(8 - bits)
      col 4: 1 / posterize step
      cols 5-7: padding
    """
    k_op, k_bin, k_sign = jax.random.split(key, 3)
    op_idx = jax.random.randint(k_op, (n,), 0, NUM_OPS, dtype=jnp.int32)
    bin_idx = jax.random.randint(k_bin, (n,), 0, NUM_BINS, dtype=jnp.int32)
    flip = jax.random.randint(k_sign, (n,), 0, 2, dtype=jnp.int32)

    mag = jnp.asarray(_MAG_TABLE_NP)[op_idx, bin_idx]
    mag = jnp.where(jnp.asarray(_SIGNED_NP)[op_idx] & (flip == 1), -mag, mag)

    ratio = 1.0 + mag
    solar_thr = mag * (1.0 / 255.0)
    bits_clip = jnp.clip(mag, 0.0, 8.0)
    post_step = jnp.exp2(8.0 - bits_clip)     # always finite
    post_inv = jnp.exp2(bits_clip - 8.0)      # exact power of two
    zeros = jnp.zeros_like(ratio)
    params = jnp.stack([op_idx.astype(jnp.float32), ratio, solar_thr,
                        post_step, post_inv, zeros, zeros, zeros], axis=1)
    return op_idx, params.astype(jnp.float32)


def _build_masks(h, w, hw_pad):
    """Static (2, hw_pad) float32 masks shared by every channel segment:
       row 0: 1.0 where sharpness keeps the ORIGINAL pixel (image border + pad lanes)
       row 1: 1.0 on valid (non-pad) lanes."""
    hw = h * w
    border2d = np.ones((h, w), np.float32)
    if h > 2 and w > 2:
        border2d[1:-1, 1:-1] = 0.0
    m = np.zeros((2, hw_pad), np.float32)
    m[0, :] = 1.0
    m[0, :hw] = border2d.reshape(-1)
    m[1, :hw] = 1.0
    return m


# ---------------------------------------------------------------------------
# Pallas kernel: a block of IMGS_PER_BLOCK whole images (one image per row,
# channels along the padded lane axis).  Branches gated by a per-block
# op-presence bitmask so un-drawn augmentations are skipped at runtime.
# ---------------------------------------------------------------------------
def _ta_kernel(bits_ref, prm_ref, img_ref, msk_ref, out_ref, *,
               height, width, channels, hw_pad):
    hw = height * width
    block = pl.program_id(0)
    needs = bits_ref[block]                      # int32 op-presence bitmask (SMEM)

    prm = prm_ref[...]                           # (R, 8) per-row params
    op_col = prm[:, 0:1]                         # (R, 1) float op code (exact)
    ratio = prm[:, 1:2]
    solar_thr = prm[:, 2:3]
    post_step = prm[:, 3:4]
    post_inv = prm[:, 4:5]
    one_m_ratio = 1.0 - ratio

    def needs_op(code):
        return ((needs >> code) & 1) != 0

    def seg(ci):                                 # lane window of channel ci
        return slice(ci * hw_pad, (ci + 1) * hw_pad)

    def chan(ci):                                # (R, hw_pad) pixels of channel ci
        return img_ref[:, seg(ci)]

    def sel_full(code, cand):                    # single vselect per candidate
        out_ref[...] = jnp.where(op_col == float(code), cand, out_ref[...])

    def sel_seg(code, ci, cand):
        s = seg(ci)
        out_ref[:, s] = jnp.where(op_col == float(code), cand, out_ref[:, s])

    def gray():                                  # (R, hw_pad); zero on pad lanes
        if channels == 3:
            return 0.2989 * chan(0) + 0.587 * chan(1) + 0.114 * chan(2)
        return chan(0)

    def fast_recip(d):                           # EUP approx + 1 Newton step
        r = pl.reciprocal(d, approx=True)
        return r * (2.0 - d * r)

    x = img_ref[...]                             # (R, C*hw_pad)

    # Identity and unsupported ops fall through to the input.
    # TODO(synk): ShearX/Y, TranslateX/Y, Rotate (gather-based NN warp) and Equalize
    # (256-bin per-channel histogram LUT) are not implemented; they fall back to Identity.
    out_ref[...] = x

    @pl.when(needs_op(OP_BRIGHTNESS))
    def _():
        sel_full(OP_BRIGHTNESS, jnp.clip(ratio * x, 0.0, 1.0))

    @pl.when(needs_op(OP_COLOR))
    def _():
        g = gray()
        for ci in range(channels):
            sel_seg(OP_COLOR, ci,
                    jnp.clip(ratio * chan(ci) + one_m_ratio * g, 0.0, 1.0))

    @pl.when(needs_op(OP_CONTRAST))
    def _():
        # pad lanes are zero, so the plain lane sum equals the sum over valid pixels.
        mean = jnp.sum(gray(), axis=1, keepdims=True) * (1.0 / hw)    # (R, 1)
        for ci in range(channels):
            sel_seg(OP_CONTRAST, ci,
                    jnp.clip(ratio * chan(ci) + one_m_ratio * mean, 0.0, 1.0))

    @pl.when(needs_op(OP_SHARPNESS))
    def _():
        border = msk_ref[0:1, :]                 # (1, hw_pad); 1 => keep original pixel
        for ci in range(channels):
            xc = chan(ci)
            # Separable 3x3 [[1,1,1],[1,5,1],[1,1,1]]/13 blur: 4 lane rolls per channel,
            # rolls stay strictly inside this channel's segment (no cross-channel wrap).
            s = xc + pltpu.roll(xc, 1, 1) + pltpu.roll(xc, hw_pad - 1, 1)
            acc = (s + pltpu.roll(s, width, 1) + pltpu.roll(s, hw_pad - width, 1)
                   + 4.0 * xc)
            degen = jnp.where(border > 0.5, xc, acc * (1.0 / 13.0))
            sel_seg(OP_SHARPNESS, ci,
                    jnp.clip(ratio * xc + one_m_ratio * degen, 0.0, 1.0))

    @pl.when(needs_op(OP_POSTERIZE))
    def _():
        q = jnp.floor(x * 255.0)
        sel_full(OP_POSTERIZE, jnp.floor(q * post_inv) * post_step * (1.0 / 255.0))

    @pl.when(needs_op(OP_SOLARIZE))
    def _():
        sel_full(OP_SOLARIZE, jnp.where(x >= solar_thr, 1.0 - x, x))

    @pl.when(needs_op(OP_AUTOCONTRAST))
    def _():
        valid = msk_ref[1:2, :] > 0.5            # (1, hw_pad) — excludes pad lanes
        for ci in range(channels):
            xc = chan(ci)
            mn = jnp.min(jnp.where(valid, xc, 1e30), axis=1, keepdims=True)
            mx = jnp.max(jnp.where(valid, xc, -1e30), axis=1, keepdims=True)
            flat = (mx - mn) <= 0.0
            scale = jnp.where(flat, 1.0, fast_recip(jnp.where(flat, 1.0, mx - mn)))
            lo = jnp.where(flat, 0.0, mn)
            sel_seg(OP_AUTOCONTRAST, ci, jnp.clip((xc - lo) * scale, 0.0, 1.0))


@functools.partial(jax.jit, static_argnames=("imgs_per_block",))
def trivial_augment_wide(img, key, *, imgs_per_block=None):
    """Batched TrivialAugmentWide: one independent (op, magnitude, sign) draw per image.

    img: (N, C, H, W) float32 in [0, 1]; returns the augmented batch (same shape).
    Compile-once: all randomness is runtime data; only shape changes retrace.
    """
    n, c, h, w = img.shape
    if c not in (1, 3):
        raise ValueError("TrivialAugmentWide expects 1 or 3 channels")
    hw = h * w
    hw_pad = ((hw + 127) // 128) * 128           # lane-dense: unmasked vld/vst
    lanes = c * hw_pad

    # --- images per block: sublane-packed rows, ~<=2 MiB of input per step (v7x-safe) ---
    if imgs_per_block is None:
        ipb = max(1, (2 * 1024 * 1024) // (lanes * 4))
        ipb = min(64, max(8, (ipb // 8) * 8))
    else:
        ipb = max(8, ((int(imgs_per_block) + 7) // 8) * 8)
    ipb = min(ipb, max(8, ((n + 7) // 8) * 8))   # don't over-pad tiny batches
    num_blocks = -(-n // ipb)
    n_pad = num_blocks * ipb

    # --- per-image draw (runtime data) ---
    op_idx, params = _draw_ops(key, n)
    if n_pad > n:
        pad_prm = jnp.tile(jnp.asarray([[0.0, 1.0, 0.0, 1.0, 1.0, 0.0, 0.0, 0.0]],
                                       jnp.float32), (n_pad - n, 1))
        params = jnp.concatenate([params, pad_prm], axis=0)
        op_idx_p = jnp.concatenate([op_idx, jnp.zeros((n_pad - n,), jnp.int32)])
    else:
        op_idx_p = op_idx

    # per-block op-presence bitmask -> lets the kernel skip un-drawn augmentations
    blocks = op_idx_p.reshape(num_blocks, ipb)
    present = (blocks[:, :, None] == jnp.arange(NUM_OPS, dtype=jnp.int32)).any(axis=1)
    op_bits = jnp.sum(
        jnp.where(present, jnp.int32(1) << jnp.arange(NUM_OPS, dtype=jnp.int32), 0),
        axis=1).astype(jnp.int32)

    # --- pack: one image per row, channels along the (padded) lane axis ---
    x = img.reshape(n, c, hw).astype(jnp.float32)
    x = jnp.pad(x, ((0, n_pad - n), (0, 0), (0, hw_pad - hw)))
    x = x.reshape(n_pad, lanes)

    masks = jnp.asarray(_build_masks(h, w, hw_pad))            # (2, hw_pad) static

    out = pl.pallas_call(
        functools.partial(_ta_kernel, height=h, width=w, channels=c, hw_pad=hw_pad),
        out_shape=jax.ShapeDtypeStruct((n_pad, lanes), jnp.float32),
        grid_spec=pltpu.PrefetchScalarGridSpec(
            num_scalar_prefetch=1,                             # op-presence bitmask -> SMEM
            grid=(num_blocks,),
            in_specs=[
                pl.BlockSpec((ipb, 8), lambda b, *_: (b, 0)),      # per-row op params
                pl.BlockSpec((ipb, lanes), lambda b, *_: (b, 0)),  # image rows
                pl.BlockSpec((2, hw_pad), lambda b, *_: (0, 0)),   # static masks (resident)
            ],
            out_specs=pl.BlockSpec((ipb, lanes), lambda b, *_: (b, 0)),
        ),
        compiler_params=pltpu.CompilerParams(
            dimension_semantics=("parallel",),   # megacore sharding of the block axis (v7x)
            vmem_limit_bytes=32 * 1024 * 1024,
        ),
    )(op_bits, params, x, masks)

    out = out.reshape(n_pad, c, hw_pad)[:n, :, :hw]
    return out.reshape(n, c, h, w)


# ---------------------------------------------------------------------------
# Pure-JAX (non-Pallas) reference with identical semantics, for validation.
# ---------------------------------------------------------------------------
@jax.jit
def _reference(img, key):
    n, c, h, w = img.shape
    hw = h * w
    op_idx, params = _draw_ops(key, n)
    border2d = np.ones((h, w), np.float32)
    if h > 2 and w > 2:
        border2d[1:-1, 1:-1] = 0.0
    border = jnp.asarray(border2d.reshape(1, hw))
    x = img.reshape(n, c, hw).astype(jnp.float32)

    def one(xi, op, p):
        ratio, thr, step, inv = p[1], p[2], p[3], p[4]
        one_m = 1.0 - ratio

        def blend(d):
            return jnp.clip(ratio * xi + one_m * d, 0.0, 1.0)

        if c == 3:
            gray = 0.2989 * xi[0:1] + 0.587 * xi[1:2] + 0.114 * xi[2:3]
        else:
            gray = xi[0:1]
        bright = jnp.clip(ratio * xi, 0.0, 1.0)
        color = blend(gray)
        contrast = blend(jnp.sum(gray) * (1.0 / hw))
        s = xi + jnp.roll(xi, 1, axis=1) + jnp.roll(xi, -1, axis=1)
        acc = s + jnp.roll(s, w, axis=1) + jnp.roll(s, -w, axis=1) + 4.0 * xi
        degen = jnp.where(border > 0.5, xi, acc * (1.0 / 13.0))
        sharp = blend(degen)
        q = jnp.floor(xi * 255.0)
        poster = jnp.floor(q * inv) * step * (1.0 / 255.0)
        solar = jnp.where(xi >= thr, 1.0 - xi, xi)
        mn = jnp.min(xi, axis=1, keepdims=True)
        mx = jnp.max(xi, axis=1, keepdims=True)
        flat = (mx - mn) <= 0.0
        scale = jnp.where(flat, 1.0, 1.0 / jnp.where(flat, 1.0, mx - mn))
        lo = jnp.where(flat, 0.0, mn)
        auto = jnp.clip((xi - lo) * scale, 0.0, 1.0)

        out = xi
        for code, cand in ((OP_BRIGHTNESS, bright), (OP_COLOR, color),
                           (OP_CONTRAST, contrast), (OP_SHARPNESS, sharp),
                           (OP_POSTERIZE, poster), (OP_SOLARIZE, solar),
                           (OP_AUTOCONTRAST, auto)):
            out = jnp.where(op == code, cand, out)
        return out

    return jax.vmap(one)(x, op_idx, params).reshape(n, c, h, w)


if __name__ == "__main__":
    root = jax.random.PRNGKey(0)
    k_img, k_aug = jax.random.split(root)
    # 20 RGB 16x16 images with 8 images/block -> 3 grid steps, covers padding + multi-block.
    img = jax.random.uniform(k_img, (20, 3, 16, 16), dtype=jnp.float32)

    out = jax.block_until_ready(trivial_augment_wide(img, k_aug, imgs_per_block=8))

    assert out.shape == img.shape and out.dtype == jnp.float32
    assert bool(jnp.all(jnp.isfinite(out)))
    assert bool(jnp.all((out >= 0.0) & (out <= 1.0)))

    ref = jax.block_until_ready(_reference(img, k_aug))
    max_err = float(jnp.max(jnp.abs(out - ref)))
    # Tolerance covers the EUP approx-reciprocal (+Newton) in AutoContrast and
    # reduction/roll-order float differences; uint8 quantum is ~3.9e-3 for comparison.
    assert max_err < 1e-3, f"kernel/reference mismatch: {max_err}"

    print("KERNEL_OK")
</pallas_src>

<mosaic_0001>
module attributes {stable_mosaic.version = 11 : i64} {
  func.func @_ta_kernel(%arg0: i32, %arg1: memref<3xi32, #tpu.memory_space<smem>>, %arg2: memref<8x8xf32, #tpu.memory_space<vmem>>, %arg3: memref<8x768xf32, #tpu.memory_space<vmem>>, %arg4: memref<2x256xf32, #tpu.memory_space<vmem>>, %arg5: memref<8x768xf32, #tpu.memory_space<vmem>>) attributes {dimension_semantics = [#tpu.dimension_semantics<parallel>], iteration_bounds = array<i64: 3>, scalar_prefetch = 1 : i64, scratch_operands = 0 : i64, tpu.core_type = #tpu.core_type<tc>, window_params = [{transform_indices = @transform_0, window_bounds = array<i64: 8, 8>}, {transform_indices = @transform_1, window_bounds = array<i64: 8, 768>}, {pipeline_mode = #tpu.pipeline_mode<synchronous>, transform_indices = @transform_2, window_bounds = array<i64: 2, 256>}, {transform_indices = @transform_3, window_bounds = array<i64: 8, 768>}]} {
    %0 = arith.index_cast %arg0 : i32 to index
    %1 = memref.load %arg1[%0] : memref<3xi32, #tpu.memory_space<smem>>
    %c0 = arith.constant 0 : index
    %c0_0 = arith.constant 0 : index
    %2 = vector.load %arg2[%c0, %c0_0] : memref<8x8xf32, #tpu.memory_space<vmem>>, vector<8x8xf32>
    %3 = vector.extract_strided_slice %2 {offsets = [0, 0], sizes = [8, 1], strides = [1, 1]} : vector<8x8xf32> to vector<8x1xf32>
    %4 = vector.extract_strided_slice %2 {offsets = [0, 1], sizes = [8, 1], strides = [1, 1]} : vector<8x8xf32> to vector<8x1xf32>
    %5 = vector.extract_strided_slice %2 {offsets = [0, 2], sizes = [8, 1], strides = [1, 1]} : vector<8x8xf32> to vector<8x1xf32>
    %6 = vector.extract_strided_slice %2 {offsets = [0, 3], sizes = [8, 1], strides = [1, 1]} : vector<8x8xf32> to vector<8x1xf32>
    %7 = vector.extract_strided_slice %2 {offsets = [0, 4], sizes = [8, 1], strides = [1, 1]} : vector<8x8xf32> to vector<8x1xf32>
    %cst = arith.constant 1.000000e+00 : f32
    %8 = vector.broadcast %cst : f32 to vector<8x1xf32>
    %9 = arith.subf %8, %4 : vector<8x1xf32>
    %c0_1 = arith.constant 0 : index
    %c0_2 = arith.constant 0 : index
    %10 = vector.load %arg3[%c0_1, %c0_2] : memref<8x768xf32, #tpu.memory_space<vmem>>, vector<8x768xf32>
    %c0_3 = arith.constant 0 : index
    %c0_4 = arith.constant 0 : index
    %11 = vector.load %arg5[%c0_3, %c0_4] : memref<8x768xf32, #tpu.memory_space<vmem>>, vector<8x768xf32>
    tpu.vector_store %arg5[%c0_3, %c0_4], %10 {strides = array<i32>} : memref<8x768xf32, #tpu.memory_space<vmem>>, vector<8x768xf32>,
    %c6_i32 = arith.constant 6 : i32
    %12 = arith.shrsi %1, %c6_i32 : i32
    %c1_i32 = arith.constant 1 : i32
    %13 = arith.andi %12, %c1_i32 : i32
    %c0_i32 = arith.constant 0 : i32
    %14 = arith.cmpi ne, %13, %c0_i32 : i32
    %15 = arith.extui %14 : i1 to i32
    %c0_i32_5 = arith.constant 0 : i32
    %16 = arith.cmpi ne, %15, %c0_i32_5 : i32
    scf.if %16 {
      %47 = vector.broadcast %4 : vector<8x1xf32> to vector<8x768xf32>
      %48 = arith.mulf %47, %10 : vector<8x768xf32>
      %cst_24 = arith.constant 0.000000e+00 : f32
      %cst_25 = arith.constant 1.000000e+00 : f32
      %49 = vector.broadcast %cst_24 : f32 to vector<8x768xf32>
      %50 = arith.maximumf %49, %48 : vector<8x768xf32>
      %51 = vector.broadcast %cst_25 : f32 to vector<8x768xf32>
      %52 = arith.minimumf %51, %50 : vector<8x768xf32>
      %cst_26 = arith.constant 6.000000e+00 : f32
      %53 = vector.broadcast %cst_26 : f32 to vector<8x1xf32>
      %54 = arith.cmpf oeq, %3, %53 : vector<8x1xf32>
      %c0_27 = arith.constant 0 : index
      %c0_28 = arith.constant 0 : index
      %55 = vector.load %arg5[%c0_27, %c0_28] : memref<8x768xf32, #tpu.memory_space<vmem>>, vector<8x768xf32>
      %56 = vector.shape_cast %54 : vector<8x1xi1> to vector<8x1xi1>
      %57 = vector.broadcast %56 : vector<8x1xi1> to vector<8x768xi1>
      %58 = arith.select %57, %52, %55 : vector<8x768xi1>, vector<8x768xf32>
      %c0_29 = arith.constant 0 : index
      %c0_30 = arith.constant 0 : index
      %59 = vector.load %arg5[%c0_29, %c0_30] : memref<8x768xf32, #tpu.memory_space<vmem>>, vector<8x768xf32>
      tpu.vector_store %arg5[%c0_29, %c0_30], %58 {strides = array<i32>} : memref<8x768xf32, #tpu.memory_space<vmem>>, vector<8x768xf32>,
    } else {
    }
    %c7_i32 = arith.constant 7 : i32
    %17 = arith.shrsi %1, %c7_i32 : i32
    %c1_i32_6 = arith.constant 1 : i32
    %18 = arith.andi %17, %c1_i32_6 : i32
    %c0_i32_7 = arith.constant 0 : i32
    %19 = arith.cmpi ne, %18, %c0_i32_7 : i32
    %20 = arith.extui %19 : i1 to i32
    %c0_i32_8 = arith.constant 0 : i32
    %21 = arith.cmpi ne, %20, %c0_i32_8 : i32
    scf.if %21 {
      %c0_24 = arith.constant 0 : index
      %c0_25 = arith.constant 0 : index
      %47 = vector.load %arg3[%c0_24, %c0_25] : memref<8x768xf32, #tpu.memory_space<vmem>>, vector<8x256xf32>
      %cst_26 = arith.constant 2.989000e-01 : f32
      %48 = vector.broadcast %cst_26 : f32 to vector<8x256xf32>
      %49 = arith.mulf %48, %47 : vector<8x256xf32>
      %c0_27 = arith.constant 0 : index
      %c256 = arith.constant 256 : index
      %50 = vector.load %arg3[%c0_27, %c256] : memref<8x768xf32, #tpu.memory_space<vmem>>, vector<8x256xf32>
      %cst_28 = arith.constant 5.870000e-01 : f32
      %51 = vector.broadcast %cst_28 : f32 to vector<8x256xf32>
      %52 = arith.mulf %51, %50 : vector<8x256xf32>
      %53 = arith.addf %49, %52 : vector<8x256xf32>
      %c0_29 = arith.constant 0 : index
      %c512 = arith.constant 512 : index
      %54 = vector.load %arg3[%c0_29, %c512] : memref<8x768xf32, #tpu.memory_space<vmem>>, vector<8x256xf32>
      %cst_30 = arith.constant 1.140000e-01 : f32
      %55 = vector.broadcast %cst_30 : f32 to vector<8x256xf32>
      %56 = arith.mulf %55, %54 : vector<8x256xf32>
      %57 = arith.addf %53, %56 : vector<8x256xf32>
      %c0_31 = arith.constant 0 : index
      %c0_32 = arith.constant 0 : index
      %58 = vector.load %arg3[%c0_31, %c0_32] : memref<8x768xf32, #tpu.memory_space<vmem>>, vector<8x256xf32>
      %59 = vector.broadcast %4 : vector<8x1xf32> to vector<8x256xf32>
      %60 = arith.mulf %59, %58 : vector<8x256xf32>
      %61 = vector.broadcast %9 : vector<8x1xf32> to vector<8x256xf32>
      %62 = arith.mulf %61, %57 : vector<8x256xf32>
      %63 = arith.addf %60, %62 : vector<8x256xf32>
      %cst_33 = arith.constant 0.000000e+00 : f32
      %cst_34 = arith.constant 1.000000e+00 : f32
      %64 = vector.broadcast %cst_33 : f32 to vector<8x256xf32>
      %65 = arith.maximumf %64, %63 : vector<8x256xf32>
      %66 = vector.broadcast %cst_34 : f32 to vector<8x256xf32>
      %67 = arith.minimumf %66, %65 : vector<8x256xf32>
      %cst_35 = arith.constant 7.000000e+00 : f32
      %68 = vector.broadcast %cst_35 : f32 to vector<8x1xf32>
      %69 = arith.cmpf oeq, %3, %68 : vector<8x1xf32>
      %c0_36 = arith.constant 0 : index
      %c0_37 = arith.constant 0 : index
      %70 = vector.load %arg5[%c0_36, %c0_37] : memref<8x768xf32, #tpu.memory_space<vmem>>, vector<8x256xf32>
      %71 = vector.shape_cast %69 : vector<8x1xi1> to vector<8x1xi1>
      %72 = vector.broadcast %71 : vector<8x1xi1> to vector<8x256xi1>
      %73 = arith.select %72, %67, %70 : vector<8x256xi1>, vector<8x256xf32>
      %c0_38 = arith.constant 0 : index
      %c0_39 = arith.constant 0 : index
      %74 = vector.load %arg5[%c0_38, %c0_39] : memref<8x768xf32, #tpu.memory_space<vmem>>, vector<8x256xf32>
      tpu.vector_store %arg5[%c0_38, %c0_39], %73 {strides = array<i32>} : memref<8x768xf32, #tpu.memory_space<vmem>>, vector<8x256xf32>,
      %c0_40 = arith.constant 0 : index
      %c256_41 = arith.constant 256 : index
      %75 = vector.load %arg3[%c0_40, %c256_41] : memref<8x768xf32, #tpu.memory_space<vmem>>, vector<8x256xf32>
      %76 = vector.broadcast %4 : vector<8x1xf32> to vector<8x256xf32>
      %77 = arith.mulf %76, %75 : vector<8x256xf32>
      %78 = vector.broadcast %9 : vector<8x1xf32> to vector<8x256xf32>
      %79 = arith.mulf %78, %57 : vector<8x256xf32>
      %80 = arith.addf %77, %79 : vector<8x256xf32>
      %cst_42 = arith.constant 0.000000e+00 : f32
      %cst_43 = arith.constant 1.000000e+00 : f32
      %81 = vector.broadcast %cst_42 : f32 to vector<8x256xf32>
      %82 = arith.maximumf %81, %80 : vector<8x256xf32>
      %83 = vector.broadcast %cst_43 : f32 to vector<8x256xf32>
      %84 = arith.minimumf %83, %82 : vector<8x256xf32>
      %cst_44 = arith.constant 7.000000e+00 : f32
      %85 = vector.broadcast %cst_44 : f32 to vector<8x1xf32>
      %86 = arith.cmpf oeq, %3, %85 : vector<8x1xf32>
      %c0_45 = arith.constant 0 : index
      %c256_46 = arith.constant 256 : index
      %87 = vector.load %arg5[%c0_45, %c256_46] : memref<8x768xf32, #tpu.memory_space<vmem>>, vector<8x256xf32>
      %88 = vector.shape_cast %86 : vector<8x1xi1> to vector<8x1xi1>
      %89 = vector.broadcast %88 : vector<8x1xi1> to vector<8x256xi1>
      %90 = arith.select %89, %84, %87 : vector<8x256xi1>, vector<8x256xf32>
      %c0_47 = arith.constant 0 : index
      %c256_48 = arith.constant 256 : index
      %91 = vector.load %arg5[%c0_47, %c256_48] : memref<8x768xf32, #tpu.memory_space<vmem>>, vector<8x256xf32>
      tpu.vector_store %arg5[%c0_47, %c256_48], %90 {strides = array<i32>} : memref<8x768xf32, #tpu.memory_space<vmem>>, vector<8x256xf32>,
      %c0_49 = arith.constant 0 : index
      %c512_50 = arith.constant 512 : index
      %92 = vector.load %arg3[%c0_49, %c512_50] : memref<8x768xf32, #tpu.memory_space<vmem>>, vector<8x256xf32>
      %93 = vector.broadcast %4 : vector<8x1xf32> to vector<8x256xf32>
      %94 = arith.mulf %93, %92 : vector<8x256xf32>
      %95 = vector.broadcast %9 : vector<8x1xf32> to vector<8x256xf32>
      %96 = arith.mulf %95, %57 : vector<8x256xf32>
      %97 = arith.addf %94, %96 : vector<8x256xf32>
      %cst_51 = arith.constant 0.000000e+00 : f32
      %cst_52 = arith.constant 1.000000e+00 : f32
      %98 = vector.broadcast %cst_51 : f32 to vector<8x256xf32>
      %99 = arith.maximumf %98, %97 : vector<8x256xf32>
      %100 = vector.broadcast %cst_52 : f32 to vector<8x256xf32>
      %101 = arith.minimumf %100, %99 : vector<8x256xf32>
      %cst_53 = arith.constant 7.000000e+00 : f32
      %102 = vector.broadcast %cst_53 : f32 to vector<8x1xf32>
      %103 = arith.cmpf oeq, %3, %102 : vector<8x1xf32>
      %c0_54 = arith.constant 0 : index
      %c512_55 = arith.constant 512 : index
      %104 = vector.load %arg5[%c0_54, %c512_55] : memref<8x768xf32, #tpu.memory_space<vmem>>, vector<8x256xf32>
      %105 = vector.shape_cast %103 : vector<8x1xi1> to vector<8x1xi1>
      %106 = vector.broadcast %105 : vector<8x1xi1> to vector<8x256xi1>
      %107 = arith.select %106, %101, %104 : vector<8x256xi1>, vector<8x256xf32>
      %c0_56 = arith.constant 0 : index
      %c512_57 = arith.constant 512 : index
      %108 = vector.load %arg5[%c0_56, %c512_57] : memref<8x768xf32, #tpu.memory_space<vmem>>, vector<8x256xf32>
      tpu.vector_store %arg5[%c0_56, %c512_57], %107 {strides = array<i32>} : memref<8x768xf32, #tpu.memory_space<vmem>>, vector<8x256xf32>,
    } else {
    }
    %c8_i32 = arith.constant 8 : i32
    %22 = arith.shrsi %1, %c8_i32 : i32
    %c1_i32_9 = arith.constant 1 : i32
    %23 = arith.andi %22, %c1_i32_9 : i32
    %c0_i32_10 = arith.constant 0 : i32
    %24 = arith.cmpi ne, %23, %c0_i32_10 : i32
    %25 = arith.extui %24 : i1 to i32
    %c0_i32_11 = arith.constant 0 : i32
    %26 = arith.cmpi ne, %25, %c0_i32_11 : i32
    scf.if %26 {
      %c0_24 = arith.constant 0 : index
      %c0_25 = arith.constant 0 : index
      %47 = vector.load %arg3[%c0_24, %c0_25] : memref<8x768xf32, #tpu.memory_space<vmem>>, vector<8x256xf32>
      %cst_26 = arith.constant 2.989000e-01 : f32
      %48 = vector.broadcast %cst_26 : f32 to vector<8x256xf32>
      %49 = arith.mulf %48, %47 : vector<8x256xf32>
      %c0_27 = arith.constant 0 : index
      %c256 = arith.constant 256 : index
      %50 = vector.load %arg3[%c0_27, %c256] : memref<8x768xf32, #tpu.memory_space<vmem>>, vector<8x256xf32>
      %cst_28 = arith.constant 5.870000e-01 : f32
      %51 = vector.broadcast %cst_28 : f32 to vector<8x256xf32>
      %52 = arith.mulf %51, %50 : vector<8x256xf32>
      %53 = arith.addf %49, %52 : vector<8x256xf32>
      %c0_29 = arith.constant 0 : index
      %c512 = arith.constant 512 : index
      %54 = vector.load %arg3[%c0_29, %c512] : memref<8x768xf32, #tpu.memory_space<vmem>>, vector<8x256xf32>
      %cst_30 = arith.constant 1.140000e-01 : f32
      %55 = vector.broadcast %cst_30 : f32 to vector<8x256xf32>
      %56 = arith.mulf %55, %54 : vector<8x256xf32>
      %57 = arith.addf %53, %56 : vector<8x256xf32>
      %cst_31 = arith.constant dense<0.000000e+00> : vector<8xf32>
      %58 = vector.multi_reduction <add>, %57, %cst_31 [1] : vector<8x256xf32> to vector<8xf32>
      %59 = vector.shape_cast %58 : vector<8xf32> to vector<8x1xf32>
      %cst_32 = arith.constant 3.906250e-03 : f32
      %60 = vector.broadcast %cst_32 : f32 to vector<8x1xf32>
      %61 = arith.mulf %59, %60 : vector<8x1xf32>
      %c0_33 = arith.constant 0 : index
      %c0_34 = arith.constant 0 : index
      %62 = vector.load %arg3[%c0_33, %c0_34] : memref<8x768xf32, #tpu.memory_space<vmem>>, vector<8x256xf32>
      %63 = vector.broadcast %4 : vector<8x1xf32> to vector<8x256xf32>
      %64 = arith.mulf %63, %62 : vector<8x256xf32>
      %65 = arith.mulf %9, %61 : vector<8x1xf32>
      %66 = vector.broadcast %65 : vector<8x1xf32> to vector<8x256xf32>
      %67 = arith.addf %64, %66 : vector<8x256xf32>
      %cst_35 = arith.constant 0.000000e+00 : f32
      %cst_36 = arith.constant 1.000000e+00 : f32
      %68 = vector.broadcast %cst_35 : f32 to vector<8x256xf32>
      %69 = arith.maximumf %68, %67 : vector<8x256xf32>
      %70 = vector.broadcast %cst_36 : f32 to vector<8x256xf32>
      %71 = arith.minimumf %70, %69 : vector<8x256xf32>
      %cst_37 = arith.constant 8.000000e+00 : f32
      %72 = vector.broadcast %cst_37 : f32 to vector<8x1xf32>
      %73 = arith.cmpf oeq, %3, %72 : vector<8x1xf32>
      %c0_38 = arith.constant 0 : index
      %c0_39 = arith.constant 0 : index
      %74 = vector.load %arg5[%c0_38, %c0_39] : memref<8x768xf32, #tpu.memory_space<vmem>>, vector<8x256xf32>
      %75 = vector.shape_cast %73 : vector<8x1xi1> to vector<8x1xi1>
      %76 = vector.broadcast %75 : vector<8x1xi1> to vector<8x256xi1>
      %77 = arith.select %76, %71, %74 : vector<8x256xi1>, vector<8x256xf32>
      %c0_40 = arith.constant 0 : index
      %c0_41 = arith.constant 0 : index
      %78 = vector.load %arg5[%c0_40, %c0_41] : memref<8x768xf32, #tpu.memory_space<vmem>>, vector<8x256xf32>
      tpu.vector_store %arg5[%c0_40, %c0_41], %77 {strides = array<i32>} : memref<8x768xf32, #tpu.memory_space<vmem>>, vector<8x256xf32>,
      %c0_42 = arith.constant 0 : index
      %c256_43 = arith.constant 256 : index
      %79 = vector.load %arg3[%c0_42, %c256_43] : memref<8x768xf32, #tpu.memory_space<vmem>>, vector<8x256xf32>
      %80 = vector.broadcast %4 : vector<8x1xf32> to vector<8x256xf32>
      %81 = arith.mulf %80, %79 : vector<8x256xf32>
      %82 = arith.mulf %9, %61 : vector<8x1xf32>
      %83 = vector.broadcast %82 : vector<8x1xf32> to vector<8x256xf32>
      %84 = arith.addf %81, %83 : vector<8x256xf32>
      %cst_44 = arith.constant 0.000000e+00 : f32
      %cst_45 = arith.constant 1.000000e+00 : f32
      %85 = vector.broadcast %cst_44 : f32 to vector<8x256xf32>
      %86 = arith.maximumf %85, %84 : vector<8x256xf32>
      %87 = vector.broadcast %cst_45 : f32 to vector<8x256xf32>
      %88 = arith.minimumf %87, %86 : vector<8x256xf32>
      %cst_46 = arith.constant 8.000000e+00 : f32
      %89 = vector.broadcast %cst_46 : f32 to vector<8x1xf32>
      %90 = arith.cmpf oeq, %3, %89 : vector<8x1xf32>
      %c0_47 = arith.constant 0 : index
      %c256_48 = arith.constant 256 : index
      %91 = vector.load %arg5[%c0_47, %c256_48] : memref<8x768xf32, #tpu.memory_space<vmem>>, vector<8x256xf32>
      %92 = vector.shape_cast %90 : vector<8x1xi1> to vector<8x1xi1>
      %93 = vector.broadcast %92 : vector<8x1xi1> to vector<8x256xi1>
      %94 = arith.select %93, %88, %91 : vector<8x256xi1>, vector<8x256xf32>
      %c0_49 = arith.constant 0 : index
      %c256_50 = arith.constant 256 : index
      %95 = vector.load %arg5[%c0_49, %c256_50] : memref<8x768xf32, #tpu.memory_space<vmem>>, vector<8x256xf32>
      tpu.vector_store %arg5[%c0_49, %c256_50], %94 {strides = array<i32>} : memref<8x768xf32, #tpu.memory_space<vmem>>, vector<8x256xf32>,
      %c0_51 = arith.constant 0 : index
      %c512_52 = arith.constant 512 : index
      %96 = vector.load %arg3[%c0_51, %c512_52] : memref<8x768xf32, #tpu.memory_space<vmem>>, vector<8x256xf32>
      %97 = vector.broadcast %4 : vector<8x1xf32> to vector<8x256xf32>
      %98 = arith.mulf %97, %96 : vector<8x256xf32>
      %99 = arith.mulf %9, %61 : vector<8x1xf32>
      %100 = vector.broadcast %99 : vector<8x1xf32> to vector<8x256xf32>
      %101 = arith.addf %98, %100 : vector<8x256xf32>
      %cst_53 = arith.constant 0.000000e+00 : f32
      %cst_54 = arith.constant 1.000000e+00 : f32
      %102 = vector.broadcast %cst_53 : f32 to vector<8x256xf32>
      %103 = arith.maximumf %102, %101 : vector<8x256xf32>
      %104 = vector.broadcast %cst_54 : f32 to vector<8x256xf32>
      %105 = arith.minimumf %104, %103 : vector<8x256xf32>
      %cst_55 = arith.constant 8.000000e+00 : f32
      %106 = vector.broadcast %cst_55 : f32 to vector<8x1xf32>
      %107 = arith.cmpf oeq, %3, %106 : vector<8x1xf32>
      %c0_56 = arith.constant 0 : index
      %c512_57 = arith.constant 512 : index
      %108 = vector.load %arg5[%c0_56, %c512_57] : memref<8x768xf32, #tpu.memory_space<vmem>>, vector<8x256xf32>
      %109 = vector.shape_cast %107 : vector<8x1xi1> to vector<8x1xi1>
      %110 = vector.broadcast %109 : vector<8x1xi1> to vector<8x256xi1>
      %111 = arith.select %110, %105, %108 : vector<8x256xi1>, vector<8x256xf32>
      %c0_58 = arith.constant 0 : index
      %c512_59 = arith.constant 512 : index
      %112 = vector.load %arg5[%c0_58, %c512_59] : memref<8x768xf32, #tpu.memory_space<vmem>>, vector<8x256xf32>
      tpu.vector_store %arg5[%c0_58, %c512_59], %111 {strides = array<i32>} : memref<8x768xf32, #tpu.memory_space<vmem>>, vector<8x256xf32>,
    } else {
    }
    %c9_i32 = arith.constant 9 : i32
    %27 = arith.shrsi %1, %c9_i32 : i32
    %c1_i32_12 = arith.constant 1 : i32
    %28 = arith.andi %27, %c1_i32_12 : i32
    %c0_i32_13 = arith.constant 0 : i32
    %29 = arith.cmpi ne, %28, %c0_i32_13 : i32
    %30 = arith.extui %29 : i1 to i32
    %c0_i32_14 = arith.constant 0 : i32
    %31 = arith.cmpi ne, %30, %c0_i32_14 : i32
    scf.if %31 {
      %c0_24 = arith.constant 0 : index
      %c0_25 = arith.constant 0 : index
      %47 = vector.load %arg4[%c0_24, %c0_25] : memref<2x256xf32, #tpu.memory_space<vmem>>, vector<1x256xf32>
      %c0_26 = arith.constant 0 : index
      %c0_27 = arith.constant 0 : index
      %48 = vector.load %arg3[%c0_26, %c0_27] : memref<8x768xf32, #tpu.memory_space<vmem>>, vector<8x256xf32>
      %c1_i32_28 = arith.constant 1 : i32
      %49 = tpu.dynamic_rotate %48 by %c1_i32_28 dim 1 : vector<8x256xf32>, i32 -> vector<8x256xf32>
      %50 = arith.addf %48, %49 : vector<8x256xf32>
      %c255_i32 = arith.constant 255 : i32
      %51 = tpu.dynamic_rotate %48 by %c255_i32 dim 1 : vector<8x256xf32>, i32 -> vector<8x256xf32>
      %52 = arith.addf %50, %51 : vector<8x256xf32>
      %c16_i32 = arith.constant 16 : i32
      %53 = tpu.dynamic_rotate %52 by %c16_i32 dim 1 : vector<8x256xf32>, i32 -> vector<8x256xf32>
      %54 = arith.addf %52, %53 : vector<8x256xf32>
      %c240_i32 = arith.constant 240 : i32
      %55 = tpu.dynamic_rotate %52 by %c240_i32 dim 1 : vector<8x256xf32>, i32 -> vector<8x256xf32>
      %56 = arith.addf %54, %55 : vector<8x256xf32>
      %cst_29 = arith.constant 4.000000e+00 : f32
      %57 = vector.broadcast %cst_29 : f32 to vector<8x256xf32>
      %58 = arith.mulf %57, %48 : vector<8x256xf32>
      %59 = arith.addf %56, %58 : vector<8x256xf32>
      %cst_30 = arith.constant 5.000000e-01 : f32
      %60 = vector.broadcast %cst_30 : f32 to vector<1x256xf32>
      %61 = arith.cmpf ogt, %47, %60 : vector<1x256xf32>
      %cst_31 = arith.constant 0.0769230798 : f32
      %62 = vector.broadcast %cst_31 : f32 to vector<8x256xf32>
      %63 = arith.mulf %59, %62 : vector<8x256xf32>
      %64 = vector.shape_cast %61 : vector<1x256xi1> to vector<1x256xi1>
      %65 = vector.broadcast %64 : vector<1x256xi1> to vector<8x256xi1>
      %66 = arith.select %65, %48, %63 : vector<8x256xi1>, vector<8x256xf32>
      %67 = vector.broadcast %4 : vector<8x1xf32> to vector<8x256xf32>
      %68 = arith.mulf %67, %48 : vector<8x256xf32>
      %69 = vector.broadcast %9 : vector<8x1xf32> to vector<8x256xf32>
      %70 = arith.mulf %69, %66 : vector<8x256xf32>
      %71 = arith.addf %68, %70 : vector<8x256xf32>
      %cst_32 = arith.constant 0.000000e+00 : f32
      %cst_33 = arith.constant 1.000000e+00 : f32
      %72 = vector.broadcast %cst_32 : f32 to vector<8x256xf32>
      %73 = arith.maximumf %72, %71 : vector<8x256xf32>
      %74 = vector.broadcast %cst_33 : f32 to vector<8x256xf32>
      %75 = arith.minimumf %74, %73 : vector<8x256xf32>
      %cst_34 = arith.constant 9.000000e+00 : f32
      %76 = vector.broadcast %cst_34 : f32 to vector<8x1xf32>
      %77 = arith.cmpf oeq, %3, %76 : vector<8x1xf32>
      %c0_35 = arith.constant 0 : index
      %c0_36 = arith.constant 0 : index
      %78 = vector.load %arg5[%c0_35, %c0_36] : memref<8x768xf32, #tpu.memory_space<vmem>>, vector<8x256xf32>
      %79 = vector.shape_cast %77 : vector<8x1xi1> to vector<8x1xi1>
      %80 = vector.broadcast %79 : vector<8x1xi1> to vector<8x256xi1>
      %81 = arith.select %80, %75, %78 : vector<8x256xi1>, vector<8x256xf32>
      %c0_37 = arith.constant 0 : index
      %c0_38 = arith.constant 0 : index
      %82 = vector.load %arg5[%c0_37, %c0_38] : memref<8x768xf32, #tpu.memory_space<vmem>>, vector<8x256xf32>
      tpu.vector_store %arg5[%c0_37, %c0_38], %81 {strides = array<i32>} : memref<8x768xf32, #tpu.memory_space<vmem>>, vector<8x256xf32>,
      %c0_39 = arith.constant 0 : index
      %c256 = arith.constant 256 : index
      %83 = vector.load %arg3[%c0_39, %c256] : memref<8x768xf32, #tpu.memory_space<vmem>>, vector<8x256xf32>
      %c1_i32_40 = arith.constant 1 : i32
      %84 = tpu.dynamic_rotate %83 by %c1_i32_40 dim 1 : vector<8x256xf32>, i32 -> vector<8x256xf32>
      %85 = arith.addf %83, %84 : vector<8x256xf32>
      %c255_i32_41 = arith.constant 255 : i32
      %86 = tpu.dynamic_rotate %83 by %c255_i32_41 dim 1 : vector<8x256xf32>, i32 -> vector<8x256xf32>
      %87 = arith.addf %85, %86 : vector<8x256xf32>
      %c16_i32_42 = arith.constant 16 : i32
      %88 = tpu.dynamic_rotate %87 by %c16_i32_42 dim 1 : vector<8x256xf32>, i32 -> vector<8x256xf32>
      %89 = arith.addf %87, %88 : vector<8x256xf32>
      %c240_i32_43 = arith.constant 240 : i32
      %90 = tpu.dynamic_rotate %87 by %c240_i32_43 dim 1 : vector<8x256xf32>, i32 -> vector<8x256xf32>
      %91 = arith.addf %89, %90 : vector<8x256xf32>
      %cst_44 = arith.constant 4.000000e+00 : f32
      %92 = vector.broadcast %cst_44 : f32 to vector<8x256xf32>
      %93 = arith.mulf %92, %83 : vector<8x256xf32>
      %94 = arith.addf %91, %93 : vector<8x256xf32>
      %cst_45 = arith.constant 5.000000e-01 : f32
      %95 = vector.broadcast %cst_45 : f32 to vector<1x256xf32>
      %96 = arith.cmpf ogt, %47, %95 : vector<1x256xf32>
      %cst_46 = arith.constant 0.0769230798 : f32
      %97 = vector.broadcast %cst_46 : f32 to vector<8x256xf32>
      %98 = arith.mulf %94, %97 : vector<8x256xf32>
      %99 = vector.shape_cast %96 : vector<1x256xi1> to vector<1x256xi1>
      %100 = vector.broadcast %99 : vector<1x256xi1> to vector<8x256xi1>
      %101 = arith.select %100, %83, %98 : vector<8x256xi1>, vector<8x256xf32>
      %102 = vector.broadcast %4 : vector<8x1xf32> to vector<8x256xf32>
      %103 = arith.mulf %102, %83 : vector<8x256xf32>
      %104 = vector.broadcast %9 : vector<8x1xf32> to vector<8x256xf32>
      %105 = arith.mulf %104, %101 : vector<8x256xf32>
      %106 = arith.addf %103, %105 : vector<8x256xf32>
      %cst_47 = arith.constant 0.000000e+00 : f32
      %cst_48 = arith.constant 1.000000e+00 : f32
      %107 = vector.broadcast %cst_47 : f32 to vector<8x256xf32>
      %108 = arith.maximumf %107, %106 : vector<8x256xf32>
      %109 = vector.broadcast %cst_48 : f32 to vector<8x256xf32>
      %110 = arith.minimumf %109, %108 : vector<8x256xf32>
      %cst_49 = arith.constant 9.000000e+00 : f32
      %111 = vector.broadcast %cst_49 : f32 to vector<8x1xf32>
      %112 = arith.cmpf oeq, %3, %111 : vector<8x1xf32>
      %c0_50 = arith.constant 0 : index
      %c256_51 = arith.constant 256 : index
      %113 = vector.load %arg5[%c0_50, %c256_51] : memref<8x768xf32, #tpu.memory_space<vmem>>, vector<8x256xf32>
      %114 = vector.shape_cast %112 : vector<8x1xi1> to vector<8x1xi1>
      %115 = vector.broadcast %114 : vector<8x1xi1> to vector<8x256xi1>
      %116 = arith.select %115, %110, %113 : vector<8x256xi1>, vector<8x256xf32>
      %c0_52 = arith.constant 0 : index
      %c256_53 = arith.constant 256 : index
      %117 = vector.load %arg5[%c0_52, %c256_53] : memref<8x768xf32, #tpu.memory_space<vmem>>, vector<8x256xf32>
      tpu.vector_store %arg5[%c0_52, %c256_53], %116 {strides = array<i32>} : memref<8x768xf32, #tpu.memory_space<vmem>>, vector<8x256xf32>,
      %c0_54 = arith.constant 0 : index
      %c512 = arith.constant 512 : index
      %118 = vector.load %arg3[%c0_54, %c512] : memref<8x768xf32, #tpu.memory_space<vmem>>, vector<8x256xf32>
      %c1_i32_55 = arith.constant 1 : i32
      %119 = tpu.dynamic_rotate %118 by %c1_i32_55 dim 1 : vector<8x256xf32>, i32 -> vector<8x256xf32>
      %120 = arith.addf %118, %119 : vector<8x256xf32>
      %c255_i32_56 = arith.constant 255 : i32
      %121 = tpu.dynamic_rotate %118 by %c255_i32_56 dim 1 : vector<8x256xf32>, i32 -> vector<8x256xf32>
      %122 = arith.addf %120, %121 : vector<8x256xf32>
      %c16_i32_57 = arith.constant 16 : i32
      %123 = tpu.dynamic_rotate %122 by %c16_i32_57 dim 1 : vector<8x256xf32>, i32 -> vector<8x256xf32>
      %124 = arith.addf %122, %123 : vector<8x256xf32>
      %c240_i32_58 = arith.constant 240 : i32
      %125 = tpu.dynamic_rotate %122 by %c240_i32_58 dim 1 : vector<8x256xf32>, i32 -> vector<8x256xf32>
      %126 = arith.addf %124, %125 : vector<8x256xf32>
      %cst_59 = arith.constant 4.000000e+00 : f32
      %127 = vector.broadcast %cst_59 : f32 to vector<8x256xf32>
      %128 = arith.mulf %127, %118 : vector<8x256xf32>
      %129 = arith.addf %126, %128 : vector<8x256xf32>
      %cst_60 = arith.constant 5.000000e-01 : f32
      %130 = vector.broadcast %cst_60 : f32 to vector<1x256xf32>
      %131 = arith.cmpf ogt, %47, %130 : vector<1x256xf32>
      %cst_61 = arith.constant 0.0769230798 : f32
      %132 = vector.broadcast %cst_61 : f32 to vector<8x256xf32>
      %133 = arith.mulf %129, %132 : vector<8x256xf32>
      %134 = vector.shape_cast %131 : vector<1x256xi1> to vector<1x256xi1>
      %135 = vector.broadcast %134 : vector<1x256xi1> to vector<8x256xi1>
      %136 = arith.select %135, %118, %133 : vector<8x256xi1>, vector<8x256xf32>
      %137 = vector.broadcast %4 : vector<8x1xf32> to vector<8x256xf32>
      %138 = arith.mulf %137, %118 : vector<8x256xf32>
      %139 = vector.broadcast %9 : vector<8x1xf32> to vector<8x256xf32>
      %140 = arith.mulf %139, %136 : vector<8x256xf32>
      %141 = arith.addf %138, %140 : vector<8x256xf32>
      %cst_62 = arith.constant 0.000000e+00 : f32
      %cst_63 = arith.constant 1.000000e+00 : f32
      %142 = vector.broadcast %cst_62 : f32 to vector<8x256xf32>
      %143 = arith.maximumf %142, %141 : vector<8x256xf32>
      %144 = vector.broadcast %cst_63 : f32 to vector<8x256xf32>
      %145 = arith.minimumf %144, %143 : vector<8x256xf32>
      %cst_64 = arith.constant 9.000000e+00 : f32
      %146 = vector.broadcast %cst_64 : f32 to vector<8x1xf32>
      %147 = arith.cmpf oeq, %3, %146 : vector<8x1xf32>
      %c0_65 = arith.constant 0 : index
      %c512_66 = arith.constant 512 : index
      %148 = vector.load %arg5[%c0_65, %c512_66] : memref<8x768xf32, #tpu.memory_space<vmem>>, vector<8x256xf32>
      %149 = vector.shape_cast %147 : vector<8x1xi1> to vector<8x1xi1>
      %150 = vector.broadcast %149 : vector<8x1xi1> to vector<8x256xi1>
      %151 = arith.select %150, %145, %148 : vector<8x256xi1>, vector<8x256xf32>
      %c0_67 = arith.constant 0 : index
      %c512_68 = arith.constant 512 : index
      %152 = vector.load %arg5[%c0_67, %c512_68] : memref<8x768xf32, #tpu.memory_space<vmem>>, vector<8x256xf32>
      tpu.vector_store %arg5[%c0_67, %c512_68], %151 {strides = array<i32>} : memref<8x768xf32, #tpu.memory_space<vmem>>, vector<8x256xf32>,
    } else {
    }
    %c10_i32 = arith.constant 10 : i32
    %32 = arith.shrsi %1, %c10_i32 : i32
    %c1_i32_15 = arith.constant 1 : i32
    %33 = arith.andi %32, %c1_i32_15 : i32
    %c0_i32_16 = arith.constant 0 : i32
    %34 = arith.cmpi ne, %33, %c0_i32_16 : i32
    %35 = arith.extui %34 : i1 to i32
    %c0_i32_17 = arith.constant 0 : i32
    %36 = arith.cmpi ne, %35, %c0_i32_17 : i32
    scf.if %36 {
      %cst_24 = arith.constant 2.550000e+02 : f32
      %47 = vector.broadcast %cst_24 : f32 to vector<8x768xf32>
      %48 = arith.mulf %10, %47 : vector<8x768xf32>
      %49 = math.floor %48 : vector<8x768xf32>
      %50 = vector.broadcast %7 : vector<8x1xf32> to vector<8x768xf32>
      %51 = arith.mulf %49, %50 : vector<8x768xf32>
      %52 = math.floor %51 : vector<8x768xf32>
      %53 = vector.broadcast %6 : vector<8x1xf32> to vector<8x768xf32>
      %54 = arith.mulf %52, %53 : vector<8x768xf32>
      %cst_25 = arith.constant 0.00392156886 : f32
      %55 = vector.broadcast %cst_25 : f32 to vector<8x768xf32>
      %56 = arith.mulf %54, %55 : vector<8x768xf32>
      %cst_26 = arith.constant 1.000000e+01 : f32
      %57 = vector.broadcast %cst_26 : f32 to vector<8x1xf32>
      %58 = arith.cmpf oeq, %3, %57 : vector<8x1xf32>
      %c0_27 = arith.constant 0 : index
      %c0_28 = arith.constant 0 : index
      %59 = vector.load %arg5[%c0_27, %c0_28] : memref<8x768xf32, #tpu.memory_space<vmem>>, vector<8x768xf32>
      %60 = vector.shape_cast %58 : vector<8x1xi1> to vector<8x1xi1>
      %61 = vector.broadcast %60 : vector<8x1xi1> to vector<8x768xi1>
      %62 = arith.select %61, %56, %59 : vector<8x768xi1>, vector<8x768xf32>
      %c0_29 = arith.constant 0 : index
      %c0_30 = arith.constant 0 : index
      %63 = vector.load %arg5[%c0_29, %c0_30] : memref<8x768xf32, #tpu.memory_space<vmem>>, vector<8x768xf32>
      tpu.vector_store %arg5[%c0_29, %c0_30], %62 {strides = array<i32>} : memref<8x768xf32, #tpu.memory_space<vmem>>, vector<8x768xf32>,
    } else {
    }
    %c11_i32 = arith.constant 11 : i32
    %37 = arith.shrsi %1, %c11_i32 : i32
    %c1_i32_18 = arith.constant 1 : i32
    %38 = arith.andi %37, %c1_i32_18 : i32
    %c0_i32_19 = arith.constant 0 : i32
    %39 = arith.cmpi ne, %38, %c0_i32_19 : i32
    %40 = arith.extui %39 : i1 to i32
    %c0_i32_20 = arith.constant 0 : i32
    %41 = arith.cmpi ne, %40, %c0_i32_20 : i32
    scf.if %41 {
      %47 = vector.broadcast %5 : vector<8x1xf32> to vector<8x768xf32>
      %48 = arith.cmpf oge, %10, %47 : vector<8x768xf32>
      %cst_24 = arith.constant 1.000000e+00 : f32
      %49 = vector.broadcast %cst_24 : f32 to vector<8x768xf32>
      %50 = arith.subf %49, %10 : vector<8x768xf32>
      %51 = arith.select %48, %50, %10 : vector<8x768xi1>, vector<8x768xf32>
      %cst_25 = arith.constant 1.100000e+01 : f32
      %52 = vector.broadcast %cst_25 : f32 to vector<8x1xf32>
      %53 = arith.cmpf oeq, %3, %52 : vector<8x1xf32>
      %c0_26 = arith.constant 0 : index
      %c0_27 = arith.constant 0 : index
      %54 = vector.load %arg5[%c0_26, %c0_27] : memref<8x768xf32, #tpu.memory_space<vmem>>, vector<8x768xf32>
      %55 = vector.shape_cast %53 : vector<8x1xi1> to vector<8x1xi1>
      %56 = vector.broadcast %55 : vector<8x1xi1> to vector<8x768xi1>
      %57 = arith.select %56, %51, %54 : vector<8x768xi1>, vector<8x768xf32>
      %c0_28 = arith.constant 0 : index
      %c0_29 = arith.constant 0 : index
      %58 = vector.load %arg5[%c0_28, %c0_29] : memref<8x768xf32, #tpu.memory_space<vmem>>, vector<8x768xf32>
      tpu.vector_store %arg5[%c0_28, %c0_29], %57 {strides = array<i32>} : memref<8x768xf32, #tpu.memory_space<vmem>>, vector<8x768xf32>,
    } else {
    }
    %c12_i32 = arith.constant 12 : i32
    %42 = arith.shrsi %1, %c12_i32 : i32
    %c1_i32_21 = arith.constant 1 : i32
    %43 = arith.andi %42, %c1_i32_21 : i32
    %c0_i32_22 = arith.constant 0 : i32
    %44 = arith.cmpi ne, %43, %c0_i32_22 : i32
    %45 = arith.extui %44 : i1 to i32
    %c0_i32_23 = arith.constant 0 : i32
    %46 = arith.cmpi ne, %45, %c0_i32_23 : i32
    scf.if %46 {
      %c1 = arith.constant 1 : index
      %c0_24 = arith.constant 0 : index
      %47 = vector.load %arg4[%c1, %c0_24] : memref<2x256xf32, #tpu.memory_space<vmem>>, vector<1x256xf32>
      %cst_25 = arith.constant 5.000000e-01 : f32
      %48 = vector.broadcast %cst_25 : f32 to vector<1x256xf32>
      %49 = arith.cmpf ogt, %47, %48 : vector<1x256xf32>
      %c0_26 = arith.constant 0 : index
      %c0_27 = arith.constant 0 : index
      %50 = vector.load %arg3[%c0_26, %c0_27] : memref<8x768xf32, #tpu.memory_space<vmem>>, vector<8x256xf32>
      %cst_28 = arith.constant 1.000000e+30 : f32
      %51 = vector.shape_cast %49 : vector<1x256xi1> to vector<1x256xi1>
      %52 = vector.broadcast %51 : vector<1x256xi1> to vector<8x256xi1>
      %53 = vector.broadcast %cst_28 : f32 to vector<8x256xf32>
      %54 = arith.select %52, %50, %53 : vector<8x256xi1>, vector<8x256xf32>
      %cst_29 = arith.constant dense<0x7F800000> : vector<8xf32>
      %55 = vector.multi_reduction <minimumf>, %54, %cst_29 [1] : vector<8x256xf32> to vector<8xf32>
      %56 = vector.shape_cast %55 : vector<8xf32> to vector<8x1xf32>
      %cst_30 = arith.constant -1.000000e+30 : f32
      %57 = vector.shape_cast %49 : vector<1x256xi1> to vector<1x256xi1>
      %58 = vector.broadcast %57 : vector<1x256xi1> to vector<8x256xi1>
      %59 = vector.broadcast %cst_30 : f32 to vector<8x256xf32>
      %60 = arith.select %58, %50, %59 : vector<8x256xi1>, vector<8x256xf32>
      %cst_31 = arith.constant dense<0xFF800000> : vector<8xf32>
      %61 = vector.multi_reduction <maximumf>, %60, %cst_31 [1] : vector<8x256xf32> to vector<8xf32>
      %62 = vector.shape_cast %61 : vector<8xf32> to vector<8x1xf32>
      %63 = arith.subf %62, %56 : vector<8x1xf32>
      %cst_32 = arith.constant 0.000000e+00 : f32
      %64 = vector.broadcast %cst_32 : f32 to vector<8x1xf32>
      %65 = arith.cmpf ole, %63, %64 : vector<8x1xf32>
      %66 = arith.subf %62, %56 : vector<8x1xf32>
      %cst_33 = arith.constant 1.000000e+00 : f32
      %67 = vector.broadcast %cst_33 : f32 to vector<8x1xf32>
      %68 = arith.select %65, %67, %66 : vector<8x1xi1>, vector<8x1xf32>
      %69 = tpu.reciprocal %68 {approx = true} : vector<8x1xf32> -> vector<8x1xf32>
      %70 = arith.mulf %68, %69 : vector<8x1xf32>
      %cst_34 = arith.constant 2.000000e+00 : f32
      %71 = vector.broadcast %cst_34 : f32 to vector<8x1xf32>
      %72 = arith.subf %71, %70 : vector<8x1xf32>
      %73 = arith.mulf %69, %72 : vector<8x1xf32>
      %cst_35 = arith.constant 1.000000e+00 : f32
      %74 = vector.broadcast %cst_35 : f32 to vector<8x1xf32>
      %75 = arith.select %65, %74, %73 : vector<8x1xi1>, vector<8x1xf32>
      %cst_36 = arith.constant 0.000000e+00 : f32
      %76 = vector.broadcast %cst_36 : f32 to vector<8x1xf32>
      %77 = arith.select %65, %76, %56 : vector<8x1xi1>, vector<8x1xf32>
      %78 = vector.broadcast %77 : vector<8x1xf32> to vector<8x256xf32>
      %79 = arith.subf %50, %78 : vector<8x256xf32>
      %80 = vector.broadcast %75 : vector<8x1xf32> to vector<8x256xf32>
      %81 = arith.mulf %79, %80 : vector<8x256xf32>
      %cst_37 = arith.constant 0.000000e+00 : f32
      %cst_38 = arith.constant 1.000000e+00 : f32
      %82 = vector.broadcast %cst_37 : f32 to vector<8x256xf32>
      %83 = arith.maximumf %82, %81 : vector<8x256xf32>
      %84 = vector.broadcast %cst_38 : f32 to vector<8x256xf32>
      %85 = arith.minimumf %84, %83 : vector<8x256xf32>
      %cst_39 = arith.constant 1.200000e+01 : f32
      %86 = vector.broadcast %cst_39 : f32 to vector<8x1xf32>
      %87 = arith.cmpf oeq, %3, %86 : vector<8x1xf32>
      %c0_40 = arith.constant 0 : index
      %c0_41 = arith.constant 0 : index
      %88 = vector.load %arg5[%c0_40, %c0_41] : memref<8x768xf32, #tpu.memory_space<vmem>>, vector<8x256xf32>
      %89 = vector.shape_cast %87 : vector<8x1xi1> to vector<8x1xi1>
      %90 = vector.broadcast %89 : vector<8x1xi1> to vector<8x256xi1>
      %91 = arith.select %90, %85, %88 : vector<8x256xi1>, vector<8x256xf32>
      %c0_42 = arith.constant 0 : index
      %c0_43 = arith.constant 0 : index
      %92 = vector.load %arg5[%c0_42, %c0_43] : memref<8x768xf32, #tpu.memory_space<vmem>>, vector<8x256xf32>
      tpu.vector_store %arg5[%c0_42, %c0_43], %91 {strides = array<i32>} : memref<8x768xf32, #tpu.memory_space<vmem>>, vector<8x256xf32>,
      %c0_44 = arith.constant 0 : index
      %c256 = arith.constant 256 : index
      %93 = vector.load %arg3[%c0_44, %c256] : memref<8x768xf32, #tpu.memory_space<vmem>>, vector<8x256xf32>
      %cst_45 = arith.constant 1.000000e+30 : f32
      %94 = vector.shape_cast %49 : vector<1x256xi1> to vector<1x256xi1>
      %95 = vector.broadcast %94 : vector<1x256xi1> to vector<8x256xi1>
      %96 = vector.broadcast %cst_45 : f32 to vector<8x256xf32>
      %97 = arith.select %95, %93, %96 : vector<8x256xi1>, vector<8x256xf32>
      %cst_46 = arith.constant dense<0x7F800000> : vector<8xf32>
      %98 = vector.multi_reduction <minimumf>, %97, %cst_46 [1] : vector<8x256xf32> to vector<8xf32>
      %99 = vector.shape_cast %98 : vector<8xf32> to vector<8x1xf32>
      %cst_47 = arith.constant -1.000000e+30 : f32
      %100 = vector.shape_cast %49 : vector<1x256xi1> to vector<1x256xi1>
      %101 = vector.broadcast %100 : vector<1x256xi1> to vector<8x256xi1>
      %102 = vector.broadcast %cst_47 : f32 to vector<8x256xf32>
      %103 = arith.select %101, %93, %102 : vector<8x256xi1>, vector<8x256xf32>
      %cst_48 = arith.constant dense<0xFF800000> : vector<8xf32>
      %104 = vector.multi_reduction <maximumf>, %103, %cst_48 [1] : vector<8x256xf32> to vector<8xf32>
      %105 = vector.shape_cast %104 : vector<8xf32> to vector<8x1xf32>
      %106 = arith.subf %105, %99 : vector<8x1xf32>
      %cst_49 = arith.constant 0.000000e+00 : f32
      %107 = vector.broadcast %cst_49 : f32 to vector<8x1xf32>
      %108 = arith.cmpf ole, %106, %107 : vector<8x1xf32>
      %109 = arith.subf %105, %99 : vector<8x1xf32>
      %cst_50 = arith.constant 1.000000e+00 : f32
      %110 = vector.broadcast %cst_50 : f32 to vector<8x1xf32>
      %111 = arith.select %108, %110, %109 : vector<8x1xi1>, vector<8x1xf32>
      %112 = tpu.reciprocal %111 {approx = true} : vector<8x1xf32> -> vector<8x1xf32>
      %113 = arith.mulf %111, %112 : vector<8x1xf32>
      %cst_51 = arith.constant 2.000000e+00 : f32
      %114 = vector.broadcast %cst_51 : f32 to vector<8x1xf32>
      %115 = arith.subf %114, %113 : vector<8x1xf32>
      %116 = arith.mulf %112, %115 : vector<8x1xf32>
      %cst_52 = arith.constant 1.000000e+00 : f32
      %117 = vector.broadcast %cst_52 : f32 to vector<8x1xf32>
      %118 = arith.select %108, %117, %116 : vector<8x1xi1>, vector<8x1xf32>
      %cst_53 = arith.constant 0.000000e+00 : f32
      %119 = vector.broadcast %cst_53 : f32 to vector<8x1xf32>
      %120 = arith.select %108, %119, %99 : vector<8x1xi1>, vector<8x1xf32>
      %121 = vector.broadcast %120 : vector<8x1xf32> to vector<8x256xf32>
      %122 = arith.subf %93, %121 : vector<8x256xf32>
      %123 = vector.broadcast %118 : vector<8x1xf32> to vector<8x256xf32>
      %124 = arith.mulf %122, %123 : vector<8x256xf32>
      %cst_54 = arith.constant 0.000000e+00 : f32
      %cst_55 = arith.constant 1.000000e+00 : f32
      %125 = vector.broadcast %cst_54 : f32 to vector<8x256xf32>
      %126 = arith.maximumf %125, %124 : vector<8x256xf32>
      %127 = vector.broadcast %cst_55 : f32 to vector<8x256xf32>
      %128 = arith.minimumf %127, %126 : vector<8x256xf32>
      %cst_56 = arith.constant 1.200000e+01 : f32
      %129 = vector.broadcast %cst_56 : f32 to vector<8x1xf32>
      %130 = arith.cmpf oeq, %3, %129 : vector<8x1xf32>
      %c0_57 = arith.constant 0 : index
      %c256_58 = arith.constant 256 : index
      %131 = vector.load %arg5[%c0_57, %c256_58] : memref<8x768xf32, #tpu.memory_space<vmem>>, vector<8x256xf32>
      %132 = vector.shape_cast %130 : vector<8x1xi1> to vector<8x1xi1>
      %133 = vector.broadcast %132 : vector<8x1xi1> to vector<8x256xi1>
      %134 = arith.select %133, %128, %131 : vector<8x256xi1>, vector<8x256xf32>
      %c0_59 = arith.constant 0 : index
      %c256_60 = arith.constant 256 : index
      %135 = vector.load %arg5[%c0_59, %c256_60] : memref<8x768xf32, #tpu.memory_space<vmem>>, vector<8x256xf32>
      tpu.vector_store %arg5[%c0_59, %c256_60], %134 {strides = array<i32>} : memref<8x768xf32, #tpu.memory_space<vmem>>, vector<8x256xf32>,
      %c0_61 = arith.constant 0 : index
      %c512 = arith.constant 512 : index
      %136 = vector.load %arg3[%c0_61, %c512] : memref<8x768xf32, #tpu.memory_space<vmem>>, vector<8x256xf32>
      %cst_62 = arith.constant 1.000000e+30 : f32
      %137 = vector.shape_cast %49 : vector<1x256xi1> to vector<1x256xi1>
      %138 = vector.broadcast %137 : vector<1x256xi1> to vector<8x256xi1>
      %139 = vector.broadcast %cst_62 : f32 to vector<8x256xf32>
      %140 = arith.select %138, %136, %139 : vector<8x256xi1>, vector<8x256xf32>
      %cst_63 = arith.constant dense<0x7F800000> : vector<8xf32>
      %141 = vector.multi_reduction <minimumf>, %140, %cst_63 [1] : vector<8x256xf32> to vector<8xf32>
      %142 = vector.shape_cast %141 : vector<8xf32> to vector<8x1xf32>
      %cst_64 = arith.constant -1.000000e+30 : f32
      %143 = vector.shape_cast %49 : vector<1x256xi1> to vector<1x256xi1>
      %144 = vector.broadcast %143 : vector<1x256xi1> to vector<8x256xi1>
      %145 = vector.broadcast %cst_64 : f32 to vector<8x256xf32>
      %146 = arith.select %144, %136, %145 : vector<8x256xi1>, vector<8x256xf32>
      %cst_65 = arith.constant dense<0xFF800000> : vector<8xf32>
      %147 = vector.multi_reduction <maximumf>, %146, %cst_65 [1] : vector<8x256xf32> to vector<8xf32>
      %148 = vector.shape_cast %147 : vector<8xf32> to vector<8x1xf32>
      %149 = arith.subf %148, %142 : vector<8x1xf32>
      %cst_66 = arith.constant 0.000000e+00 : f32
      %150 = vector.broadcast %cst_66 : f32 to vector<8x1xf32>
      %151 = arith.cmpf ole, %149, %150 : vector<8x1xf32>
      %152 = arith.subf %148, %142 : vector<8x1xf32>
      %cst_67 = arith.constant 1.000000e+00 : f32
      %153 = vector.broadcast %cst_67 : f32 to vector<8x1xf32>
      %154 = arith.select %151, %153, %152 : vector<8x1xi1>, vector<8x1xf32>
      %155 = tpu.reciprocal %154 {approx = true} : vector<8x1xf32> -> vector<8x1xf32>
      %156 = arith.mulf %154, %155 : vector<8x1xf32>
      %cst_68 = arith.constant 2.000000e+00 : f32
      %157 = vector.broadcast %cst_68 : f32 to vector<8x1xf32>
      %158 = arith.subf %157, %156 : vector<8x1xf32>
      %159 = arith.mulf %155, %158 : vector<8x1xf32>
      %cst_69 = arith.constant 1.000000e+00 : f32
      %160 = vector.broadcast %cst_69 : f32 to vector<8x1xf32>
      %161 = arith.select %151, %160, %159 : vector<8x1xi1>, vector<8x1xf32>
      %cst_70 = arith.constant 0.000000e+00 : f32
      %162 = vector.broadcast %cst_70 : f32 to vector<8x1xf32>
      %163 = arith.select %151, %162, %142 : vector<8x1xi1>, vector<8x1xf32>
      %164 = vector.broadcast %163 : vector<8x1xf32> to vector<8x256xf32>
      %165 = arith.subf %136, %164 : vector<8x256xf32>
      %166 = vector.broadcast %161 : vector<8x1xf32> to vector<8x256xf32>
      %167 = arith.mulf %165, %166 : vector<8x256xf32>
      %cst_71 = arith.constant 0.000000e+00 : f32
      %cst_72 = arith.constant 1.000000e+00 : f32
      %168 = vector.broadcast %cst_71 : f32 to vector<8x256xf32>
      %169 = arith.maximumf %168, %167 : vector<8x256xf32>
      %170 = vector.broadcast %cst_72 : f32 to vector<8x256xf32>
      %171 = arith.minimumf %170, %169 : vector<8x256xf32>
      %cst_73 = arith.constant 1.200000e+01 : f32
      %172 = vector.broadcast %cst_73 : f32 to vector<8x1xf32>
      %173 = arith.cmpf oeq, %3, %172 : vector<8x1xf32>
      %c0_74 = arith.constant 0 : index
      %c512_75 = arith.constant 512 : index
      %174 = vector.load %arg5[%c0_74, %c512_75] : memref<8x768xf32, #tpu.memory_space<vmem>>, vector<8x256xf32>
      %175 = vector.shape_cast %173 : vector<8x1xi1> to vector<8x1xi1>
      %176 = vector.broadcast %175 : vector<8x1xi1> to vector<8x256xi1>
      %177 = arith.select %176, %171, %174 : vector<8x256xi1>, vector<8x256xf32>
      %c0_76 = arith.constant 0 : index
      %c512_77 = arith.constant 512 : index
      %178 = vector.load %arg5[%c0_76, %c512_77] : memref<8x768xf32, #tpu.memory_space<vmem>>, vector<8x256xf32>
      tpu.vector_store %arg5[%c0_76, %c512_77], %177 {strides = array<i32>} : memref<8x768xf32, #tpu.memory_space<vmem>>, vector<8x256xf32>,
    } else {
    }
    return
  }
  func.func @transform_0(%arg0: i32, %arg1: memref<3xi32, #tpu.memory_space<smem>>) -> (i32, i32) {
    %c0_i32 = arith.constant 0 : i32
    %c0_i32_0 = arith.constant 0 : i32
    return %arg0, %c0_i32 : i32, i32
  }
  func.func @transform_1(%arg0: i32, %arg1: memref<3xi32, #tpu.memory_space<smem>>) -> (i32, i32) {
    %c0_i32 = arith.constant 0 : i32
    %c0_i32_0 = arith.constant 0 : i32
    return %arg0, %c0_i32 : i32, i32
  }
  func.func @transform_2(%arg0: i32, %arg1: memref<3xi32, #tpu.memory_space<smem>>) -> (i32, i32) {
    %c0_i32 = arith.constant 0 : i32
    %c0_i32_0 = arith.constant 0 : i32
    %c0_i32_1 = arith.constant 0 : i32
    return %c0_i32, %c0_i32_0 : i32, i32
  }
  func.func @transform_3(%arg0: i32, %arg1: memref<3xi32, #tpu.memory_space<smem>>) -> (i32, i32) {
    %c0_i32 = arith.constant 0 : i32
    %c0_i32_0 = arith.constant 0 : i32
    return %arg0, %c0_i32 : i32, i32
  }
}

</mosaic_0001>

<bundles_post_ra>
// kernel: eq.10
= control target key start
LH: loop header
LB: loop body
LE: loop exit
PB: predicated region body
PF: predicated region fallthrough
CT: control target
= control target key end

     0   :  { %s30_s8 = smov 112   ;;  %vm7_vm0 = vcmask 64512   ;;  %s47_s0 = inlined_call_operand.vmem [shape: s32[24], index: 0, kind: input, shape index: {}]   ;;  %s48_s1 = inlined_call_operand.vmem [shape: s32[3,8], index: 1, kind: output, shape index: {}]  }
   0x1   :  { %v4_v0 = vld [vmem:[%s47_s0] sm:$0x1]  ;;  %s29_s0 = smov 120  }
   0x2   :  { %5 = vst [vmem:[#allocation1] sm:$0x1] %v4_v0 }
   0x9   :  { %v9_v1 = vld [vmem:[#allocation1] sm:$0x1]  }
   0xa   :  { %10 = vrot.lane.b32.xlu0 %v9_v1, %s29_s0  ;;  %v15_v2 = vld [vmem:[#allocation1] sm:$0x1]  }
   0xb   :  { %v6_v3 = vld [vmem:[#allocation1] sm:$0x1]  }
   0xc   :  { %8 = vst.msk [vmem:[#allocation0] sm:$0x1] %vm7_vm0, %v6_v3  }
  0x12   :  { %16 = vrot.lane.b32.xlu0 %v15_v2, %s30_s8 }
  0x7c   :  { %v11_v4 = vpop.permute.xlu0 %10  }
  0x7d   :  { %14 = vst.msk [vmem:[#allocation0 + $0x1] sm:$0x1] %vm7_vm0, %v11_v4  }
  0x84   :  { %v17_v5 = vpop.permute.xlu0 %16  }
  0x85   :  { %20 = vst.msk [vmem:[#allocation0 + $0x2] sm:$0x1] %vm7_vm0, %v17_v5  }
  0x8c   :  { %v23_v6 = vld [vmem:[#allocation0] sm:$0xf] }
  0x8d   :  { %26 = vst [vmem:[%s48_s1] sm:$0xf] %v23_v6 }

// kernel: trivial_augment_wide.1
= control target key start
LH: loop header
LB: loop body
LE: loop exit
PB: predicated region body
PF: predicated region fallthrough
CT: control target
= control target key end

     0   :  { %s1063_s18 = smov [#allocation3]   ;;  %s1558_s0 = inlined_call_operand.vmem [shape: s32[3], index: 0, kind: input, shape index: {}]   ;;  %s1559_s1 = inlined_call_operand.vmem [shape: f32[24,8], index: 1, kind: input, shape index: {}]   ;;  %s1560_s2 = inlined_call_operand.vmem [shape: f32[24,768], index: 2, kind: input, shape index: {}]   ;;  %s1561_s3 = inlined_call_operand.vmem [shape: f32[2,256], index: 3, kind: input, shape index: {}]   ;;  %s1562_s4 = inlined_call_operand.vmem [shape: f32[24,768], index: 4, kind: output, shape index: {}]  }
   0x1   :  { %s10_s17 = sshll.u32 %s1558_s0, 4  ;;  %s11_s17 = int_to_ptr.vmem [resolvable:$true] %s10_s17 }
   0x2   :  { %13 = dma.vmem_to_smem %s11_s17, 16, %s1063_s18, [#allocation2] }
   0x3   :  { %1057 = dma.done.wait [#allocation2], 16 }
   0x4   :  { %1058 = vsyncadd [#allocation2], 4294967280 }
   0x5   :  { %16 = sfence }
   0x6   :  { %s1110_s19 = smov 0  }
   0x7 LB: > { %s969_s20 = sadd.s32 4294967295, %s1061_s19   ;;  %p973_p0 = scmp.ge.s32.totalorder %s1061_s19, 1  ;;  %s1061_s19 = sphi %s1110_s19, %s22_s19  }
   0x8   : > { %p155_p1 = scmp.lt.s32.totalorder %s1061_s19, 4 }
   0xa   : > { %p156_p2 = pnand %p973_p0, %p155_p1 }
   0xb   : > { %p183_p3 = scmp.lt.s32.totalorder (!%p156_p2), %s969_s20, 2  ;;  %s1118_s0 = sld [smem:[#allocation3 + %s969_s20]] (!%p156_p2) }
   0xc   : > { %159 = sbr.rel (%p156_p2) target bundleno = 1351 (0x547), region = 32 }
  0x11   : > { %s1572_s20 = smov (!%p183_p3, %s969_s20), 2  ;;  %s212_s6 = sshra.s32 %s1118_s0, 6 }
  0x12   : > { %s974_s21 = sshll.u32 %s1572_s20, 3  ;;  %s987_s22 = smul.u32 48, %s1572_s20 }
  0x13   : > { %s186_s25 = scalar_lea.vmem %s1559_s1, %s974_s21  ;;  %s213_s7 = sand.u32 1, %s212_s6 }
  0x14   : > { %s1126_s28 = scalar_lea.vmem %s1560_s2, %s987_s22  ;;  %s1131_s5 = scalar_lea.vmem %s1562_s4, %s987_s22  ;;  %v1133_v0 = vld [vmem:[%s186_s25] sm:$0xff] }
  0x15   : > { %v1136_v1 = vsub.f32 1.0, %v1133_v0  ;;  %v1139_v2 = vld [vmem:[%s1126_s28] sm:$0xff]  ;;  %v1142_v3 = vld [vmem:[%s1126_s28 + $0x8] sm:$0xff]  ;;  %v1145_v4 = vld [vmem:[%s1126_s28 + $0x10] sm:$0xff]  ;;  %p977_p4 = scmp.eq.s32.totalorder %s213_s7, 0 }
  0x16   : > { %206 = vst [vmem:[%s1131_s5] sm:$0xff] %v1139_v2  ;;  %v1151_v5 = vld [vmem:[%s1126_s28 + $0x18] sm:$0xff]  ;;  %v1156_v6 = vld [vmem:[%s1126_s28 + $0x20] sm:$0xff]  ;;  %v1161_v7 = vld [vmem:[%s1126_s28 + $0x28] sm:$0xff] }
  0x17   : > { %207 = vst [vmem:[%s1131_s5 + $0x8] sm:$0xff] %v1142_v3  ;;  %217 = sbr.rel (%p977_p4) target bundleno = 162 (0xa2), region = 36 }
  0x18   : > { %208 = vst [vmem:[%s1131_s5 + $0x10] sm:$0xff] %v1145_v4 }
  0x19   : > { %209 = vst [vmem:[%s1131_s5 + $0x18] sm:$0xff] %v1151_v5 }
  0x1a   : > { %210 = vst [vmem:[%s1131_s5 + $0x20] sm:$0xff] %v1156_v6 }
  0x1b   : > { %211 = vst [vmem:[%s1131_s5 + $0x28] sm:$0xff] %v1161_v7 }
  0x1c   : > { %v1064_v8 = vmov 1   ;;  %vm241_vm0 = vcmp.eq.f32.partialorder %v1133_v0, 6.0  ;;  %v1065_v9 = vmov 0  }
  0x1d   : > { %1015 = vset.pattern.permute.xlu0 %v1064_v8  ;;  %v248_v10 = vsel %vm241_vm0, 1, %v1065_v9  ;;  %v242_v24 = vld [vmem:[%s1131_s5] sm:$0xff] }
  0x1e   : > { %220 = vperm.xlu0 %1015, %v1133_v0   ;;  %v243_v25 = vld [vmem:[%s1131_s5 + $0x8] sm:$0xff] }
  0x1f   : > { %v244_v26 = vld [vmem:[%s1131_s5 + $0x10] sm:$0xff] }
  0x20   : > { %v245_v30 = vld [vmem:[%s1131_s5 + $0x18] sm:$0xff] }
  0x21   : > { %v246_v33 = vld [vmem:[%s1131_s5 + $0x20] sm:$0xff] }
  0x22   : > { %v247_v35 = vld [vmem:[%s1131_s5 + $0x28] sm:$0xff] }
  0x26   : > { %1016 = vset.pattern.permute.xlu0 %v1065_v9 }
  0x27   : > { %250 = vperm.xlu0 %1016, %v248_v10  }
  0x90   : > { %v221_v11 = vpop.permute.xlu0 %220 }
  0x91   : > { %v223_v12 = vmul.f32 %v221_v11, %v1139_v2  ;;  %v224_v13 = vmul.f32 %v221_v11, %v1142_v3  ;;  %v225_v14 = vmul.f32 %v221_v11, %v1145_v4  ;;  %v226_v15 = vmul.f32 %v221_v11, %v1151_v5 }
  0x92   : > { %v227_v16 = vmul.f32 %v221_v11, %v1156_v6  ;;  %v228_v17 = vmul.f32 %v221_v11, %v1161_v7 }
  0x93   : > { %v229_v18 = vmax.f32 %v223_v12, 0.0  ;;  %v230_v19 = vmax.f32 %v224_v13, 0.0  ;;  %v231_v20 = vmax.f32 %v225_v14, 0.0  ;;  %v232_v21 = vmax.f32 %v226_v15, 0.0 }
  0x94   : > { %v233_v22 = vmax.f32 %v227_v16, 0.0  ;;  %v234_v23 = vmax.f32 %v228_v17, 0.0 }
  0x95   : > { %v235_v27 = vmin.f32 %v229_v18, 1.0  ;;  %v236_v28 = vmin.f32 %v230_v19, 1.0  ;;  %v237_v29 = vmin.f32 %v231_v20, 1.0  ;;  %v238_v32 = vmin.f32 %v232_v21, 1.0 }
  0x96   : > { %v239_v34 = vmin.f32 %v233_v22, 1.0  ;;  %v240_v39 = vmin.f32 %v234_v23, 1.0 }
  0x99   : > { %v251_v31 = vpop.permute.xlu0 %250 }
  0x9a   : > { %vm252_vm1 = vcmp.eq.s32.totalorder %v251_v31, 1 }
  0x9b   : > { %v253_v36 = vsel %vm252_vm1, %v235_v27, %v242_v24  ;;  %v254_v37 = vsel %vm252_vm1, %v236_v28, %v243_v25  ;;  %v255_v38 = vsel %vm252_vm1, %v237_v29, %v244_v26  ;;  %v256_v40 = vsel %vm252_vm1, %v238_v32, %v245_v30 }
  0x9c   : > { %259 = vst [vmem:[%s1131_s5] sm:$0xff] %v253_v36  ;;  %v257_v41 = vsel %vm252_vm1, %v239_v34, %v246_v33  ;;  %v258_v42 = vsel %vm252_vm1, %v240_v39, %v247_v35 }
  0x9d   : > { %260 = vst [vmem:[%s1131_s5 + $0x8] sm:$0xff] %v254_v37 }
  0x9e   : > { %261 = vst [vmem:[%s1131_s5 + $0x10] sm:$0xff] %v255_v38 }
  0x9f   : > { %262 = vst [vmem:[%s1131_s5 + $0x18] sm:$0xff] %v256_v40 }
  0xa0   : > { %263 = vst [vmem:[%s1131_s5 + $0x20] sm:$0xff] %v257_v41 }
  0xa1   : > { %264 = vst [vmem:[%s1131_s5 + $0x28] sm:$0xff] %v258_v42 }
  0xa2 PF: > { %s265_s8 = sshra.s32 %s1118_s0, 7 }
  0xa3   : > { %s266_s9 = sand.u32 1, %s265_s8 }
  0xa4   : > { %p978_p5 = scmp.eq.s32.totalorder %s266_s9, 0 }
  0xa6   : > { %270 = sbr.rel (%p978_p5) target bundleno = 311 (0x137), region = 40 }
  0xab   : > { %vm307_vm2 = vcmp.eq.f32.partialorder %v1133_v0, 7.0  ;;  %v1066_v43 = vmov 1   ;;  %v1067_v44 = vmov 0   ;;  %v271_v46 = vld [vmem:[%s1126_s28] sm:$0xff]  ;;  %v319_v47 = vld [vmem:[%s1126_s28 + $0x10] sm:$0xff]  ;;  %v320_v48 = vld [vmem:[%s1126_s28 + $0x18] sm:$0xff] }
  0xac   : > { %1017 = vset.pattern.permute.xlu0 %v1066_v43  ;;  %1018 = vset.pattern.permute.xlu1 %v1067_v44  ;;  %v310_v45 = vsel %vm307_vm2, 1, %v1067_v44  ;;  %v272_v49 = vld [vmem:[%s1126_s28 + $0x8] sm:$0xff]  ;;  %v273_v50 = vmul.f32 0.2989, %v271_v46  ;;  %v277_v52 = vmul.f32 0.587, %v319_v47 }
  0xad   : > { %289 = vperm.xlu0 %1017, %v1133_v0   ;;  %312 = vperm.xlu1 %1018, %v310_v45   ;;  %v274_v51 = vmul.f32 0.2989, %v272_v49  ;;  %v278_v53 = vmul.f32 0.587, %v320_v48  ;;  %v335_v55 = vld [vmem:[%s1126_s28 + $0x20] sm:$0xff]  ;;  %v336_v56 = vld [vmem:[%s1126_s28 + $0x28] sm:$0xff] }
  0xae   : > { %v279_v57 = vadd.f32 %v277_v52, %v273_v50  ;;  %v283_v59 = vmul.f32 0.114, %v335_v55  ;;  %v284_v60 = vmul.f32 0.114, %v336_v56  ;;  %v308_v29 = vld [vmem:[%s1131_s5] sm:$0xff]  ;;  %v309_v30 = vld [vmem:[%s1131_s5 + $0x8] sm:$0xff] }
  0xaf   : > { %v280_v58 = vadd.f32 %v278_v53, %v274_v51  ;;  %v329_v31 = vld [vmem:[%s1131_s5 + $0x10] sm:$0xff]  ;;  %v330_v36 = vld [vmem:[%s1131_s5 + $0x18] sm:$0xff]  ;;  %v345_v39 = vld [vmem:[%s1131_s5 + $0x20] sm:$0xff] }
  0xb0   : > { %v285_v61 = vadd.f32 %v283_v59, %v279_v57  ;;  %v346_v40 = vld [vmem:[%s1131_s5 + $0x28] sm:$0xff] }
  0xb1   : > { %v286_v62 = vadd.f32 %v284_v60, %v280_v58 }
  0xb5   : > { %296 = vperm.xlu0 %1017, %v1136_v1  }
  0xbd   : > { %1019 = vset.pattern.permute.xlu0 %v1067_v44 }
 0x11f   : > { %v290_v54 = vpop.permute.xlu0 %289  ;;  %v313_v20 = vpop.permute.xlu1 %312 }
 0x120   : > { %v321_v63 = vmul.f32 %v319_v47, %v290_v54  ;;  %v322_v8 = vmul.f32 %v320_v48, %v290_v54  ;;  %v292_v10 = vmul.f32 %v290_v54, %v271_v46  ;;  %v293_v11 = vmul.f32 %v290_v54, %v272_v49 }
 0x121   : > { %v337_v14 = vmul.f32 %v335_v55, %v290_v54  ;;  %v338_v15 = vmul.f32 %v336_v56, %v290_v54  ;;  %vm314_vm3 = vcmp.eq.s32.totalorder %v313_v20, 1 }
 0x127   : > { %v297_v9 = vpop.permute.xlu0 %296 }
 0x128   : > { %v299_v12 = vmul.f32 %v297_v9, %v285_v61  ;;  %v300_v13 = vmul.f32 %v297_v9, %v286_v62 }
 0x12a   : > { %v301_v16 = vadd.f32 %v299_v12, %v292_v10  ;;  %v302_v17 = vadd.f32 %v300_v13, %v293_v11  ;;  %v323_v18 = vadd.f32 %v321_v63, %v299_v12  ;;  %v324_v19 = vadd.f32 %v322_v8, %v300_v13 }
 0x12b   : > { %v339_v21 = vadd.f32 %v337_v14, %v299_v12  ;;  %v340_v22 = vadd.f32 %v338_v15, %v300_v13 }
 0x12c   : > { %v303_v23 = vmax.f32 %v301_v16, 0.0  ;;  %v304_v24 = vmax.f32 %v302_v17, 0.0  ;;  %v325_v25 = vmax.f32 %v323_v18, 0.0  ;;  %v326_v26 = vmax.f32 %v324_v19, 0.0 }
 0x12d   : > { %v341_v27 = vmax.f32 %v339_v21, 0.0  ;;  %v342_v28 = vmax.f32 %v340_v22, 0.0 }
 0x12e   : > { %v305_v32 = vmin.f32 %v303_v23, 1.0  ;;  %v306_v33 = vmin.f32 %v304_v24, 1.0  ;;  %v327_v34 = vmin.f32 %v325_v25, 1.0  ;;  %v328_v35 = vmin.f32 %v326_v26, 1.0 }
 0x12f   : > { %v343_v37 = vmin.f32 %v341_v27, 1.0  ;;  %v344_v38 = vmin.f32 %v342_v28, 1.0 }
 0x130   : > { %v315_v41 = vsel %vm314_vm3, %v305_v32, %v308_v29  ;;  %v316_v42 = vsel %vm314_vm3, %v306_v33, %v309_v30  ;;  %v331_v43 = vsel %vm314_vm3, %v327_v34, %v329_v31  ;;  %v332_v44 = vsel %vm314_vm3, %v328_v35, %v330_v36 }
 0x131   : > { %317 = vst [vmem:[%s1131_s5] sm:$0xff] %v315_v41  ;;  %v347_v45 = vsel %vm314_vm3, %v343_v37, %v345_v39  ;;  %v348_v46 = vsel %vm314_vm3, %v344_v38, %v346_v40 }
 0x132   : > { %318 = vst [vmem:[%s1131_s5 + $0x8] sm:$0xff] %v316_v42 }
 0x133   : > { %333 = vst [vmem:[%s1131_s5 + $0x10] sm:$0xff] %v331_v43 }
 0x134   : > { %334 = vst [vmem:[%s1131_s5 + $0x18] sm:$0xff] %v332_v44 }
 0x135   : > { %349 = vst [vmem:[%s1131_s5 + $0x20] sm:$0xff] %v347_v45 }
 0x136   : > { %350 = vst [vmem:[%s1131_s5 + $0x28] sm:$0xff] %v348_v46 }
 0x137 PF: > { %s351_s10 = sshra.s32 %s1118_s0, 8 }
 0x138   : > { %s352_s11 = sand.u32 1, %s351_s10 }
 0x139   : > { %p979_p6 = scmp.eq.s32.totalorder %s352_s11, 0 }
 0x13b   : > { %356 = sbr.rel (%p979_p6) target bundleno = 582 (0x246), region = 44 }
 0x140   : > { %v357_v47 = vld [vmem:[%s1126_s28] sm:$0xff]  ;;  %v358_v48 = vld [vmem:[%s1126_s28 + $0x8] sm:$0xff]  ;;  %v361_v49 = vld [vmem:[%s1126_s28 + $0x10] sm:$0xff]  ;;  %v1068_v8 = vmov 1   ;;  %v1069_v9 = vmov 0   ;;  %vm396_vm4 = vcmp.eq.f32.partialorder %v1133_v0, 8.0 }
 0x141   : > { %v359_v50 = vmul.f32 0.2989, %v357_v47  ;;  %v360_v51 = vmul.f32 0.2989, %v358_v48  ;;  %v362_v52 = vld [vmem:[%s1126_s28 + $0x18] sm:$0xff]  ;;  %v367_v53 = vld [vmem:[%s1126_s28 + $0x20] sm:$0xff]  ;;  %1020 = vset.pattern.permute.xlu0 %v1068_v8  ;;  %1021 = vset.pattern.permute.xlu1 %v1068_v8 }
 0x142   : > { %v363_v54 = vmul.f32 0.587, %v361_v49  ;;  %v364_v55 = vmul.f32 0.587, %v362_v52  ;;  %v368_v56 = vld [vmem:[%s1126_s28 + $0x28] sm:$0xff]  ;;  %v399_v13 = vsel %vm396_vm4, 1, %v1069_v9 }
 0x143   : > { %v369_v57 = vmul.f32 0.114, %v367_v53  ;;  %v370_v58 = vmul.f32 0.114, %v368_v56  ;;  %v397_v34 = vld [vmem:[%s1131_s5] sm:$0xff]  ;;  %v398_v35 = vld [vmem:[%s1131_s5 + $0x8] sm:$0xff] }
 0x144   : > { %v365_v59 = vadd.f32 %v363_v54, %v359_v50  ;;  %v366_v60 = vadd.f32 %v364_v55, %v360_v51  ;;  %v418_v36 = vld [vmem:[%s1131_s5 + $0x10] sm:$0xff]  ;;  %v419_v40 = vld [vmem:[%s1131_s5 + $0x18] sm:$0xff]  ;;  %v434_v43 = vld [vmem:[%s1131_s5 + $0x20] sm:$0xff] }
 0x145   : > { %v435_v45 = vld [vmem:[%s1131_s5 + $0x28] sm:$0xff] }
 0x146   : > { %v371_v61 = vadd.f32 %v369_v57, %v365_v59  ;;  %v372_v62 = vadd.f32 %v370_v58, %v366_v60 }
 0x148   : > { %v373_v63 = vadd.f32 %v372_v62, %v371_v61 }
 0x14a   : > { %374 = vadd.xlane.f32.xlu0 %v373_v63 }
 0x15e   : > { %379 = vperm.xlu0 %1020, %v1133_v0  }
 0x166   : > { %1023 = vset.pattern.permute.xlu0 %v1069_v9 }
 0x1bd   : > { %v375_v10 = vpop.xlane.xlu0 %374 }
 0x1be   : > { %v376_v11 = vmul.f32 0.00390625, %v375_v10 }
 0x1c0   : > { %v384_v12 = vmul.f32 %v376_v11, %v1136_v1 }
 0x1c2   : > { %387 = vperm.xlu1 %1021, %v384_v12  }
 0x1ca   : > { %1022 = vset.pattern.permute.xlu1 %v1069_v9 }
 0x1cb   : > { %401 = vperm.xlu1 %1022, %v399_v13  }
 0x1d0   : > { %v380_v14 = vpop.permute.xlu0 %379 }
 0x1d1   : > { %v382_v15 = vmul.f32 %v380_v14, %v357_v47  ;;  %v383_v16 = vmul.f32 %v380_v14, %v358_v48  ;;  %v410_v17 = vmul.f32 %v380_v14, %v361_v49  ;;  %v411_v18 = vmul.f32 %v380_v14, %v362_v52 }
 0x1d2   : > { %v426_v19 = vmul.f32 %v380_v14, %v367_v53  ;;  %v427_v20 = vmul.f32 %v380_v14, %v368_v56 }
 0x234   : > { %v388_v21 = vpop.permute.xlu1 %387 }
 0x235   : > { %v390_v22 = vadd.f32 %v388_v21, %v382_v15  ;;  %v391_v23 = vadd.f32 %v388_v21, %v383_v16  ;;  %v412_v24 = vadd.f32 %v410_v17, %v388_v21  ;;  %v413_v25 = vadd.f32 %v411_v18, %v388_v21 }
 0x236   : > { %v428_v26 = vadd.f32 %v426_v19, %v388_v21  ;;  %v429_v27 = vadd.f32 %v427_v20, %v388_v21 }
 0x237   : > { %v392_v28 = vmax.f32 %v390_v22, 0.0  ;;  %v393_v29 = vmax.f32 %v391_v23, 0.0  ;;  %v414_v30 = vmax.f32 %v412_v24, 0.0  ;;  %v415_v31 = vmax.f32 %v413_v25, 0.0 }
 0x238   : > { %v430_v32 = vmax.f32 %v428_v26, 0.0  ;;  %v431_v33 = vmax.f32 %v429_v27, 0.0 }
 0x239   : > { %v394_v37 = vmin.f32 %v392_v28, 1.0  ;;  %v395_v38 = vmin.f32 %v393_v29, 1.0  ;;  %v416_v39 = vmin.f32 %v414_v30, 1.0  ;;  %v417_v42 = vmin.f32 %v415_v31, 1.0 }
 0x23a   : > { %v432_v44 = vmin.f32 %v430_v32, 1.0  ;;  %v433_v49 = vmin.f32 %v431_v33, 1.0 }
 0x23d   : > { %v402_v41 = vpop.permute.xlu1 %401 }
 0x23e   : > { %vm403_vm5 = vcmp.eq.s32.totalorder %v402_v41, 1 }
 0x23f   : > { %v404_v46 = vsel %vm403_vm5, %v394_v37, %v397_v34  ;;  %v405_v47 = vsel %vm403_vm5, %v395_v38, %v398_v35  ;;  %v420_v48 = vsel %vm403_vm5, %v416_v39, %v418_v36  ;;  %v421_v50 = vsel %vm403_vm5, %v417_v42, %v419_v40 }
 0x240   : > { %406 = vst [vmem:[%s1131_s5] sm:$0xff] %v404_v46  ;;  %v436_v51 = vsel %vm403_vm5, %v432_v44, %v434_v43  ;;  %v437_v52 = vsel %vm403_vm5, %v433_v49, %v435_v45 }
 0x241   : > { %407 = vst [vmem:[%s1131_s5 + $0x8] sm:$0xff] %v405_v47 }
 0x242   : > { %422 = vst [vmem:[%s1131_s5 + $0x10] sm:$0xff] %v420_v48 }
 0x243   : > { %423 = vst [vmem:[%s1131_s5 + $0x18] sm:$0xff] %v421_v50 }
 0x244   : > { %438 = vst [vmem:[%s1131_s5 + $0x20] sm:$0xff] %v436_v51 }
 0x245   : > { %439 = vst [vmem:[%s1131_s5 + $0x28] sm:$0xff] %v437_v52 }
 0x246 PF: > { %s440_s12 = sshra.s32 %s1118_s0, 9 }
 0x247   : > { %s441_s13 = sand.u32 1, %s440_s12 }
 0x248   : > { %p980_p7 = scmp.eq.s32.totalorder %s441_s13, 0 }
 0x249   : > { %s1070_s14 = smov (!%p980_p7), 1   ;;  %s1071_s15 = smov (!%p980_p7), 127  }
 0x24a   : > { %445 = sbr.rel (%p980_p7) target bundleno = 889 (0x379), region = 48  ;;  %s1073_s16 = smov (!%p980_p7), 16  }
 0x24b   : > { %s1075_s17 = smov (!%p980_p7), 112  }
 0x24f   : > { %v1241_v53 = vld [vmem:[%s1126_s28 + $0x10] sm:$0xff]  ;;  %v1244_v54 = vld [vmem:[%s1126_s28] sm:$0xff]  ;;  %v1253_v56 = vld [vmem:[%s1126_s28 + $0x18] sm:$0xff]  ;;  %v453_v62 = vlaneseq  ;;  %v1072_v14 = vmov 1   ;;  %v1074_v27 = vmov 0   ;;  %vm521_vm8 = vcmp.eq.f32.partialorder %v1133_v0, 9.0 }
 0x250   : > { %535 = vrot.lane.b32.xlu1 %v1241_v53, %s1070_s14  ;;  %449 = vrot.lane.b32.xlu0 %v1244_v54, %s1070_s14  ;;  %v1249_v55 = vld [vmem:[%s1126_s28 + $0x20] sm:$0xff]  ;;  %v1256_v57 = vld [vmem:[%s1126_s28 + $0x8] sm:$0xff]  ;;  %v524_v43 = vsel %vm521_vm8, 1, %v1074_v27 }
 0x251   : > { %593 = vrot.lane.b32.xlu2 %v1249_v55, %s1070_s14  ;;  %v1259_v58 = vld [vmem:[%s1126_s28 + $0x28] sm:$0xff]  ;;  %v1270_v8 = vand.u32 127, %v453_v62  ;;  %1025 = vset.pattern.permute.xlu1 %v1072_v14 }
 0x252   : > { %1024 = vset.pattern.permute.xlu0 %v1072_v14  ;;  %1026 = vset.pattern.permute.xlu2 %v1074_v27  ;;  %v487_v14 = vmul.f32 4.0, %v1244_v54 }
 0x253   : > { %vm455_vm6 = vcmp.lt.s32.totalorder %v1270_v8, 1  ;;  %vm464_vm7 = vcmp.lt.s32.totalorder %v1270_v8, 127  ;;  %vm473_vm9 = vcmp.lt.s32.totalorder %v1270_v8, 16  ;;  %vm482_vm10 = vcmp.lt.s32.totalorder %v1270_v8, 112 }
 0x258   : > { %537 = vrot.lane.b32.xlu1 %v1253_v56, %s1070_s14  ;;  %451 = vrot.lane.b32.xlu0 %v1256_v57, %s1070_s14 }
 0x259   : > { %595 = vrot.lane.b32.xlu2 %v1259_v58, %s1070_s14 }
 0x260   : > { %462 = vrot.lane.b32.xlu1 %v1256_v57, %s1071_s15  ;;  %460 = vrot.lane.b32.xlu0 %v1244_v54, %s1071_s15 }
 0x261   : > { %543 = vrot.lane.b32.xlu2 %v1241_v53, %s1071_s15 }
 0x268   : > { %601 = vrot.lane.b32.xlu1 %v1249_v55, %s1071_s15  ;;  %545 = vrot.lane.b32.xlu0 %v1253_v56, %s1071_s15 }
 0x269   : > { %603 = vrot.lane.b32.xlu2 %v1259_v58, %s1071_s15 }
 0x2ab   : > { %v594_v59 = vpop.permute.xlu2 %593 }
 0x2b3   : > { %v596_v63 = vpop.permute.xlu2 %595 }
 0x2b4   : > { %v598_v23 = vsel %vm455_vm6, %v596_v63, %v594_v59  ;;  %v597_v39 = vsel %vm455_vm6, %v594_v59, %v596_v63 }
 0x2b5   : > { %v599_v28 = vadd.f32 %v598_v23, %v1249_v55  ;;  %v600_v41 = vadd.f32 %v597_v39, %v1259_v58 }
 0x2bb   : > { %v544_v11 = vpop.permute.xlu2 %543 }
 0x2c2   : > { %v536_v60 = vpop.permute.xlu1 %535  ;;  %v450_v61 = vpop.permute.xlu0 %449 }
 0x2c3   : > { %v604_v26 = vpop.permute.xlu2 %603 }
 0x2ca   : > { %v538_v9 = vpop.permute.xlu1 %537  ;;  %v452_v10 = vpop.permute.xlu0 %451 }
 0x2cb   : > { %v456_v12 = vsel %vm455_vm6, %v450_v61, %v452_v10  ;;  %v457_v13 = vsel %vm455_vm6, %v452_v10, %v450_v61  ;;  %v539_v24 = vsel %vm455_vm6, %v536_v60, %v538_v9  ;;  %v540_v25 = vsel %vm455_vm6, %v538_v9, %v536_v60 }
 0x2cc   : > { %v458_v15 = vadd.f32 %v457_v13, %v1244_v54  ;;  %v459_v16 = vadd.f32 %v456_v12, %v1256_v57  ;;  %v541_v29 = vadd.f32 %v540_v25, %v1241_v53  ;;  %v542_v30 = vadd.f32 %v539_v24, %v1253_v56 }
 0x2d2   : > { %v463_v17 = vpop.permute.xlu1 %462  ;;  %v461_v18 = vpop.permute.xlu0 %460 }
 0x2d3   : > { %v465_v19 = vsel %vm464_vm7, %v461_v18, %v463_v17  ;;  %v466_v20 = vsel %vm464_vm7, %v463_v17, %v461_v18 }
 0x2d4   : > { %v467_v21 = vadd.f32 %v465_v19, %v458_v15  ;;  %v468_v22 = vadd.f32 %v466_v20, %v459_v16 }
 0x2d6   : > { %471 = vrot.lane.b32.xlu1 %v468_v22, %s1073_s16  ;;  %469 = vrot.lane.b32.xlu0 %v467_v21, %s1073_s16 }
 0x2da   : > { %v602_v31 = vpop.permute.xlu1 %601  ;;  %v546_v32 = vpop.permute.xlu0 %545 }
 0x2db   : > { %v605_v33 = vsel %vm464_vm7, %v602_v31, %v604_v26  ;;  %v547_v34 = vsel %vm464_vm7, %v544_v11, %v546_v32  ;;  %v548_v35 = vsel %vm464_vm7, %v546_v32, %v544_v11  ;;  %v606_v40 = vsel %vm464_vm7, %v604_v26, %v602_v31 }
 0x2dc   : > { %v607_v36 = vadd.f32 %v605_v33, %v599_v28  ;;  %v549_v37 = vadd.f32 %v547_v34, %v541_v29  ;;  %v550_v38 = vadd.f32 %v548_v35, %v542_v30  ;;  %v608_v42 = vadd.f32 %v606_v40, %v600_v41 }
 0x2dd   : > { %v488_v11 = vmul.f32 4.0, %v1256_v57  ;;  %v567_v26 = vmul.f32 4.0, %v1241_v53 }
 0x2de   : > { %609 = vrot.lane.b32.xlu1 %v607_v36, %s1073_s16  ;;  %553 = vrot.lane.b32.xlu0 %v550_v38, %s1073_s16 }
 0x2df   : > { %551 = vrot.lane.b32.xlu2 %v549_v37, %s1073_s16 }
 0x2e6   : > { %480 = vrot.lane.b32.xlu1 %v468_v22, %s1075_s17  ;;  %478 = vrot.lane.b32.xlu0 %v467_v21, %s1075_s17 }
 0x2e7   : > { %611 = vrot.lane.b32.xlu2 %v608_v42, %s1073_s16 }
 0x2ee   : > { %617 = vrot.lane.b32.xlu1 %v607_v36, %s1075_s17  ;;  %561 = vrot.lane.b32.xlu0 %v550_v38, %s1075_s17 }
 0x2ef   : > { %559 = vrot.lane.b32.xlu2 %v549_v37, %s1075_s17 }
 0x2f6   : > { %510 = vperm.xlu1 %1025, %v1136_v1   ;;  %503 = vperm.xlu0 %1024, %v1133_v0   ;;  %v446_v1 = vld [vmem:[%s1561_s3] ss:$2 sm:$0x3] }
 0x2f7   : > { %619 = vrot.lane.b32.xlu2 %v608_v42, %s1075_s17  ;;  %vm491_vm11 = vcmp.gt.f32.partialorder %v446_v1, 0.5 }
 0x2f8   : > { %v494_v10 = vsel %vm491_vm11, 1, %v1074_v27 }
 0x2f9   : > { %v495_v19 = vperm.slane %v494_v10, 0  ;;  %v496_v20 = vperm.slane %v494_v10, 1 }
 0x2fb   : > { %vm1348_vm12 = vcmp.eq.s32.totalorder %v495_v19, 1  ;;  %vm1352_vm13 = vcmp.eq.s32.totalorder %v496_v20, 1 }
 0x2fe   : > { %1027 = vset.pattern.permute.xlu0 %v1074_v27  ;;  %v568_v27 = vmul.f32 4.0, %v1253_v56 }
 0x2ff   : > { %526 = vperm.xlu2 %1026, %v524_v43  }
 0x339   : > { %v552_v44 = vpop.permute.xlu2 %551 }
 0x341   : > { %v612_v47 = vpop.permute.xlu2 %611 }
 0x348   : > { %v472_v45 = vpop.permute.xlu1 %471  ;;  %v470_v46 = vpop.permute.xlu0 %469 }
 0x349   : > { %v560_v50 = vpop.permute.xlu2 %559  ;;  %v474_v51 = vsel %vm473_vm9, %v470_v46, %v472_v45  ;;  %v475_v52 = vsel %vm473_vm9, %v472_v45, %v470_v46 }
 0x34a   : > { %v476_v61 = vadd.f32 %v475_v52, %v467_v21  ;;  %v477_v62 = vadd.f32 %v474_v51, %v468_v22  ;;  %v625_v21 = vmul.f32 4.0, %v1249_v55  ;;  %v626_v22 = vmul.f32 4.0, %v1259_v58 }
 0x350   : > { %v610_v48 = vpop.permute.xlu1 %609  ;;  %v554_v49 = vpop.permute.xlu0 %553 }
 0x351   : > { %v613_v15 = vsel %vm473_vm9, %v610_v48, %v612_v47  ;;  %v614_v16 = vsel %vm473_vm9, %v612_v47, %v610_v48  ;;  %v555_v17 = vsel %vm473_vm9, %v552_v44, %v554_v49  ;;  %v556_v18 = vsel %vm473_vm9, %v554_v49, %v552_v44  ;;  %v620_v23 = vpop.permute.xlu2 %619 }
 0x352   : > { %v615_v28 = vadd.f32 %v614_v16, %v607_v36  ;;  %v616_v29 = vadd.f32 %v613_v15, %v608_v42  ;;  %v557_v30 = vadd.f32 %v556_v18, %v549_v37  ;;  %v558_v31 = vadd.f32 %v555_v17, %v550_v38 }
 0x358   : > { %v481_v59 = vpop.permute.xlu1 %480  ;;  %v479_v60 = vpop.permute.xlu0 %478 }
 0x359   : > { %v483_v63 = vsel %vm482_vm10, %v479_v60, %v481_v59  ;;  %v484_v9 = vsel %vm482_vm10, %v481_v59, %v479_v60 }
 0x35a   : > { %v485_v12 = vadd.f32 %v483_v63, %v476_v61  ;;  %v486_v13 = vadd.f32 %v484_v9, %v477_v62 }
 0x35c   : > { %v489_v24 = vadd.f32 %v487_v14, %v485_v12  ;;  %v490_v25 = vadd.f32 %v488_v11, %v486_v13 }
 0x35e   : > { %v492_v38 = vmul.f32 0.07692308, %v489_v24  ;;  %v493_v44 = vmul.f32 0.07692308, %v490_v25 }
 0x360   : > { %v618_v32 = vpop.permute.xlu1 %617  ;;  %v562_v33 = vpop.permute.xlu0 %561  ;;  %v499_v52 = vsel %vm1348_vm12, %v1244_v54, %v492_v38  ;;  %v500_v60 = vsel %vm1352_vm13, %v1256_v57, %v493_v44 }
 0x361   : > { %v621_v34 = vsel %vm482_vm10, %v618_v32, %v620_v23  ;;  %v622_v35 = vsel %vm482_vm10, %v620_v23, %v618_v32  ;;  %v563_v39 = vsel %vm482_vm10, %v560_v50, %v562_v33  ;;  %v564_v40 = vsel %vm482_vm10, %v562_v33, %v560_v50  ;;  %v585_v33 = vld [vmem:[%s1131_s5 + $0x10] sm:$0xff] }
 0x362   : > { %v623_v41 = vadd.f32 %v621_v34, %v615_v28  ;;  %v624_v43 = vadd.f32 %v622_v35, %v616_v29  ;;  %v565_v36 = vadd.f32 %v563_v39, %v557_v30  ;;  %v566_v42 = vadd.f32 %v564_v40, %v558_v31  ;;  %v522_v30 = vld [vmem:[%s1131_s5] sm:$0xff]  ;;  %v586_v34 = vld [vmem:[%s1131_s5 + $0x18] sm:$0xff] }
 0x364   : > { %v627_v45 = vadd.f32 %v625_v21, %v623_v41  ;;  %v628_v46 = vadd.f32 %v626_v22, %v624_v43  ;;  %v569_v47 = vadd.f32 %v567_v26, %v565_v36  ;;  %v570_v48 = vadd.f32 %v568_v27, %v566_v42  ;;  %v527_v22 = vpop.permute.xlu2 %526  ;;  %v643_v43 = vld [vmem:[%s1131_s5 + $0x20] sm:$0xff]  ;;  %v644_v42 = vld [vmem:[%s1131_s5 + $0x28] sm:$0xff] }
 0x365   : > { %vm528_vm14 = vcmp.eq.s32.totalorder %v527_v22, 1 }
 0x366   : > { %v629_v8 = vmul.f32 0.07692308, %v627_v45  ;;  %v630_v1 = vmul.f32 0.07692308, %v628_v46  ;;  %v571_v50 = vmul.f32 0.07692308, %v569_v47 }
 0x367   : > { %v572_v51 = vmul.f32 0.07692308, %v570_v48 }
 0x368   : > { %v511_v59 = vpop.permute.xlu1 %510  ;;  %v573_v61 = vsel %vm1348_vm12, %v1241_v53, %v571_v50  ;;  %v631_v62 = vsel %vm1348_vm12, %v1249_v55, %v629_v8  ;;  %v632_v63 = vsel %vm1352_vm13, %v1259_v58, %v630_v1  ;;  %v504_v9 = vpop.permute.xlu0 %503 }
 0x369   : > { %v513_v10 = vmul.f32 %v511_v59, %v499_v52  ;;  %v514_v11 = vmul.f32 %v511_v59, %v500_v60  ;;  %v574_v12 = vsel %vm1352_vm13, %v1253_v56, %v572_v51  ;;  %v577_v13 = vmul.f32 %v573_v61, %v511_v59 }
 0x36a   : > { %v578_v14 = vmul.f32 %v574_v12, %v511_v59  ;;  %v635_v15 = vmul.f32 %v631_v62, %v511_v59  ;;  %v636_v16 = vmul.f32 %v632_v63, %v511_v59  ;;  %v506_v17 = vmul.f32 %v504_v9, %v1244_v54 }
 0x36b   : > { %v507_v18 = vmul.f32 %v504_v9, %v1256_v57  ;;  %v575_v19 = vmul.f32 %v1241_v53, %v504_v9  ;;  %v576_v20 = vmul.f32 %v1253_v56, %v504_v9  ;;  %v633_v21 = vmul.f32 %v1249_v55, %v504_v9 }
 0x36c   : > { %v515_v23 = vadd.f32 %v513_v10, %v506_v17  ;;  %v634_v24 = vmul.f32 %v1259_v58, %v504_v9  ;;  %v523_v58 = vld [vmem:[%s1131_s5 + $0x8] sm:$0xff] }
 0x36d   : > { %v516_v25 = vadd.f32 %v514_v11, %v507_v18  ;;  %v579_v26 = vadd.f32 %v577_v13, %v575_v19  ;;  %v580_v27 = vadd.f32 %v578_v14, %v576_v20  ;;  %v637_v54 = vadd.f32 %v635_v15, %v633_v21 }
 0x36e   : > { %v517_v28 = vmax.f32 %v515_v23, 0.0  ;;  %v638_v57 = vadd.f32 %v636_v16, %v634_v24 }
 0x36f   : > { %v518_v53 = vmax.f32 %v516_v25, 0.0  ;;  %v581_v56 = vmax.f32 %v579_v26, 0.0  ;;  %v582_v29 = vmax.f32 %v580_v27, 0.0  ;;  %v639_v55 = vmax.f32 %v637_v54, 0.0 }
 0x370   : > { %v519_v31 = vmin.f32 %v517_v28, 1.0  ;;  %v640_v32 = vmax.f32 %v638_v57, 0.0 }
 0x371   : > { %v520_v35 = vmin.f32 %v518_v53, 1.0  ;;  %v583_v39 = vmin.f32 %v581_v56, 1.0  ;;  %v584_v40 = vmin.f32 %v582_v29, 1.0  ;;  %v641_v41 = vmin.f32 %v639_v55, 1.0 }
 0x372   : > { %v642_v36 = vmin.f32 %v640_v32, 1.0  ;;  %v529_v37 = vsel %vm528_vm14, %v519_v31, %v522_v30 }
 0x373   : > { %v530_v38 = vsel %vm528_vm14, %v520_v35, %v523_v58  ;;  %531 = vst [vmem:[%s1131_s5] sm:$0xff] %v529_v37  ;;  %v587_v44 = vsel %vm528_vm14, %v583_v39, %v585_v33  ;;  %v588_v45 = vsel %vm528_vm14, %v584_v40, %v586_v34  ;;  %v645_v46 = vsel %vm528_vm14, %v641_v41, %v643_v43 }
 0x374   : > { %532 = vst [vmem:[%s1131_s5 + $0x8] sm:$0xff] %v530_v38  ;;  %v646_v47 = vsel %vm528_vm14, %v642_v36, %v644_v42 }
 0x375   : > { %589 = vst [vmem:[%s1131_s5 + $0x10] sm:$0xff] %v587_v44 }
 0x376   : > { %590 = vst [vmem:[%s1131_s5 + $0x18] sm:$0xff] %v588_v45 }
 0x377   : > { %647 = vst [vmem:[%s1131_s5 + $0x20] sm:$0xff] %v645_v46 }
 0x378   : > { %648 = vst [vmem:[%s1131_s5 + $0x28] sm:$0xff] %v646_v47 }
 0x379 PF: > { %s649_s21 = sshra.s32 %s1118_s0, 10 }
 0x37a   : > { %s650_s22 = sand.u32 1, %s649_s21 }
 0x37b   : > { %p981_p8 = scmp.eq.s32.totalorder %s650_s22, 0 }
 0x37d   : > { %654 = sbr.rel (%p981_p8) target bundleno = 1035 (0x40b), region = 52 }
 0x382   : > { %vm700_vm15 = vcmp.eq.f32.partialorder %v1133_v0, 10.0  ;;  %v1076_v48 = vmov 4   ;;  %v1077_v49 = vmov 0   ;;  %v1078_v1 = vmov 3   ;;  %v701_v56 = vld [vmem:[%s1131_s5] sm:$0xff]  ;;  %v702_v29 = vld [vmem:[%s1131_s5 + $0x8] sm:$0xff] }
 0x383   : > { %1028 = vset.pattern.permute.xlu0 %v1076_v48  ;;  %1030 = vset.pattern.permute.xlu1 %v1077_v49  ;;  %v707_v8 = vsel %vm700_vm15, 1, %v1077_v49  ;;  %v655_v50 = vmul.f32 255.0, %v1139_v2  ;;  %v656_v51 = vmul.f32 255.0, %v1142_v3  ;;  %v657_v52 = vmul.f32 255.0, %v1145_v4  ;;  %v703_v31 = vld [vmem:[%s1131_s5 + $0x10] sm:$0xff]  ;;  %v704_v32 = vld [vmem:[%s1131_s5 + $0x18] sm:$0xff] }
 0x384   : > { %669 = vperm.xlu0 %1028, %v1133_v0   ;;  %709 = vperm.xlu1 %1030, %v707_v8   ;;  %v658_v59 = vmul.f32 255.0, %v1151_v5  ;;  %v659_v60 = vmul.f32 255.0, %v1156_v6  ;;  %v660_v61 = vmul.f32 255.0, %v1161_v7  ;;  %v705_v58 = vld [vmem:[%s1131_s5 + $0x20] sm:$0xff]  ;;  %v706_v43 = vld [vmem:[%s1131_s5 + $0x28] sm:$0xff] }
 0x385   : > { %v661_v63 = vfloor.f32 %v655_v50  ;;  %v662_v9 = vfloor.f32 %v656_v51  ;;  %v663_v10 = vfloor.f32 %v657_v52 }
 0x386   : > { %v664_v11 = vfloor.f32 %v658_v59  ;;  %v665_v12 = vfloor.f32 %v659_v60  ;;  %v666_v13 = vfloor.f32 %v660_v61 }
 0x38c   : > { %1029 = vset.pattern.permute.xlu0 %v1078_v1 }
 0x38d   : > { %685 = vperm.xlu0 %1029, %v1133_v0  }
 0x395   : > { %1031 = vset.pattern.permute.xlu0 %v1077_v49 }
 0x3f6   : > { %v670_v62 = vpop.permute.xlu0 %669  ;;  %v710_v24 = vpop.permute.xlu1 %709 }
 0x3f7   : > { %v672_v14 = vmul.f32 %v670_v62, %v661_v63  ;;  %v673_v15 = vmul.f32 %v670_v62, %v662_v9  ;;  %v674_v16 = vmul.f32 %v670_v62, %v663_v10  ;;  %v675_v17 = vmul.f32 %v670_v62, %v664_v11 }
 0x3f8   : > { %v676_v18 = vmul.f32 %v670_v62, %v665_v12  ;;  %v677_v19 = vmul.f32 %v670_v62, %v666_v13  ;;  %vm711_vm0 = vcmp.eq.s32.totalorder %v710_v24, 1 }
 0x3f9   : > { %v678_v20 = vfloor.f32 %v672_v14  ;;  %v679_v21 = vfloor.f32 %v673_v15  ;;  %v680_v22 = vfloor.f32 %v674_v16  ;;  %v681_v23 = vfloor.f32 %v675_v17 }
 0x3fa   : > { %v682_v26 = vfloor.f32 %v676_v18  ;;  %v683_v27 = vfloor.f32 %v677_v19 }
 0x3ff   : > { %v686_v25 = vpop.permute.xlu0 %685 }
 0x400   : > { %v688_v54 = vmul.f32 %v686_v25, %v678_v20  ;;  %v689_v28 = vmul.f32 %v686_v25, %v679_v21  ;;  %v690_v57 = vmul.f32 %v686_v25, %v680_v22  ;;  %v691_v53 = vmul.f32 %v686_v25, %v681_v23 }
 0x401   : > { %v692_v55 = vmul.f32 %v686_v25, %v682_v26  ;;  %v693_v30 = vmul.f32 %v686_v25, %v683_v27 }
 0x402   : > { %v694_v33 = vmul.f32 0.003921569, %v688_v54  ;;  %v695_v34 = vmul.f32 0.003921569, %v689_v28  ;;  %v696_v35 = vmul.f32 0.003921569, %v690_v57 }
 0x403   : > { %v697_v39 = vmul.f32 0.003921569, %v691_v53  ;;  %v698_v40 = vmul.f32 0.003921569, %v692_v55  ;;  %v699_v41 = vmul.f32 0.003921569, %v693_v30 }
 0x404   : > { %v712_v36 = vsel %vm711_vm0, %v694_v33, %v701_v56  ;;  %v713_v42 = vsel %vm711_vm0, %v695_v34, %v702_v29  ;;  %v714_v37 = vsel %vm711_vm0, %v696_v35, %v703_v31 }
 0x405   : > { %v715_v38 = vsel %vm711_vm0, %v697_v39, %v704_v32  ;;  %718 = vst [vmem:[%s1131_s5] sm:$0xff] %v712_v36  ;;  %v716_v44 = vsel %vm711_vm0, %v698_v40, %v705_v58  ;;  %v717_v45 = vsel %vm711_vm0, %v699_v41, %v706_v43 }
 0x406   : > { %719 = vst [vmem:[%s1131_s5 + $0x8] sm:$0xff] %v713_v42 }
 0x407   : > { %720 = vst [vmem:[%s1131_s5 + $0x10] sm:$0xff] %v714_v37 }
 0x408   : > { %721 = vst [vmem:[%s1131_s5 + $0x18] sm:$0xff] %v715_v38 }
 0x409   : > { %722 = vst [vmem:[%s1131_s5 + $0x20] sm:$0xff] %v716_v44 }
 0x40a   : > { %723 = vst [vmem:[%s1131_s5 + $0x28] sm:$0xff] %v717_v45 }
 0x40b PF: > { %s724_s23 = sshra.s32 %s1118_s0, 11 }
 0x40c   : > { %s725_s24 = sand.u32 1, %s724_s23 }
 0x40d   : > { %p982_p9 = scmp.eq.s32.totalorder %s725_s24, 0 }
 0x40f   : > { %729 = sbr.rel (%p982_p9) target bundleno = 1178 (0x49a), region = 56 }
 0x414   : > { %v1079_v46 = vmov 2   ;;  %vm753_vm1 = vcmp.eq.f32.partialorder %v1133_v0, 11.0  ;;  %v1080_v47 = vmov 0   ;;  %v741_v8 = vsub.f32 1.0, %v1139_v2  ;;  %v754_v59 = vld [vmem:[%s1131_s5] sm:$0xff]  ;;  %v755_v60 = vld [vmem:[%s1131_s5 + $0x8] sm:$0xff] }
 0x415   : > { %1032 = vset.pattern.permute.xlu0 %v1079_v46  ;;  %v760_v48 = vsel %vm753_vm1, 1, %v1080_v47  ;;  %v742_v1 = vsub.f32 1.0, %v1142_v3  ;;  %v743_v50 = vsub.f32 1.0, %v1145_v4  ;;  %v744_v51 = vsub.f32 1.0, %v1151_v5  ;;  %v756_v61 = vld [vmem:[%s1131_s5 + $0x10] sm:$0xff]  ;;  %v757_v63 = vld [vmem:[%s1131_s5 + $0x18] sm:$0xff] }
 0x416   : > { %732 = vperm.xlu0 %1032, %v1133_v0   ;;  %v745_v52 = vsub.f32 1.0, %v1156_v6  ;;  %v746_v62 = vsub.f32 1.0, %v1161_v7  ;;  %v758_v13 = vld [vmem:[%s1131_s5 + $0x20] sm:$0xff]  ;;  %v759_v15 = vld [vmem:[%s1131_s5 + $0x28] sm:$0xff] }
 0x41e   : > { %1033 = vset.pattern.permute.xlu0 %v1080_v47 }
 0x41f   : > { %762 = vperm.xlu0 %1033, %v760_v48  }
 0x488   : > { %v733_v49 = vpop.permute.xlu0 %732 }
 0x489   : > { %vm735_vm2 = vcmp.ge.f32.partialorder %v1139_v2, %v733_v49  ;;  %vm736_vm3 = vcmp.ge.f32.partialorder %v1142_v3, %v733_v49  ;;  %vm737_vm4 = vcmp.ge.f32.partialorder %v1145_v4, %v733_v49  ;;  %vm738_vm5 = vcmp.ge.f32.partialorder %v1151_v5, %v733_v49 }
 0x48a   : > { %vm739_vm6 = vcmp.ge.f32.partialorder %v1156_v6, %v733_v49  ;;  %vm740_vm7 = vcmp.ge.f32.partialorder %v1161_v7, %v733_v49  ;;  %v747_v10 = vsel %vm735_vm2, %v741_v8, %v1139_v2  ;;  %v748_v11 = vsel %vm736_vm3, %v742_v1, %v1142_v3 }
 0x48b   : > { %v749_v12 = vsel %vm737_vm4, %v743_v50, %v1145_v4  ;;  %v750_v14 = vsel %vm738_vm5, %v744_v51, %v1151_v5  ;;  %v751_v19 = vsel %vm739_vm6, %v745_v52, %v1156_v6  ;;  %v752_v2 = vsel %vm740_vm7, %v746_v62, %v1161_v7 }
 0x491   : > { %v763_v9 = vpop.permute.xlu0 %762 }
 0x492   : > { %vm764_vm8 = vcmp.eq.s32.totalorder %v763_v9, 1 }
 0x493   : > { %v765_v16 = vsel %vm764_vm8, %v747_v10, %v754_v59  ;;  %v766_v17 = vsel %vm764_vm8, %v748_v11, %v755_v60  ;;  %v767_v18 = vsel %vm764_vm8, %v749_v12, %v756_v61  ;;  %v768_v20 = vsel %vm764_vm8, %v750_v14, %v757_v63 }
 0x494   : > { %771 = vst [vmem:[%s1131_s5] sm:$0xff] %v765_v16  ;;  %v769_v3 = vsel %vm764_vm8, %v751_v19, %v758_v13  ;;  %v770_v4 = vsel %vm764_vm8, %v752_v2, %v759_v15 }
 0x495   : > { %772 = vst [vmem:[%s1131_s5 + $0x8] sm:$0xff] %v766_v17 }
 0x496   : > { %773 = vst [vmem:[%s1131_s5 + $0x10] sm:$0xff] %v767_v18 }
 0x497   : > { %774 = vst [vmem:[%s1131_s5 + $0x18] sm:$0xff] %v768_v20 }
 0x498   : > { %775 = vst [vmem:[%s1131_s5 + $0x20] sm:$0xff] %v769_v3 }
 0x499   : > { %776 = vst [vmem:[%s1131_s5 + $0x28] sm:$0xff] %v770_v4 }
 0x49a PF: > { %s777_s25 = sshra.s32 %s1118_s0, 12 }
 0x49b   : > { %s778_s26 = sand.u32 1, %s777_s25 }
 0x49c   : > { %p983_p10 = scmp.eq.s32.totalorder %s778_s26, 0 }
 0x49e   : > { %782 = sbr.rel (%p983_p10) target bundleno = 1351 (0x547), region = 60 }
 0x4a3   : > { %v984_v5 = vld [vmem:[%s1561_s3 + $0x1] ss:$2 sm:$0x3]  ;;  %v1081_v6 = vmov 0   ;;  %v1463_v24 = vld [vmem:[%s1126_s28 + $0x28] sm:$0xff]  ;;  %v1466_v25 = vld [vmem:[%s1126_s28 + $0x10] sm:$0xff] }
 0x4a4   : > { %vm785_vm9 = vcmp.gt.f32.partialorder %v984_v5, 0.5  ;;  %1034 = vset.pattern.permute.xlu0 %v1081_v6  ;;  %v1460_v23 = vld [vmem:[%s1126_s28 + $0x20] sm:$0xff]  ;;  %v1469_v26 = vld [vmem:[%s1126_s28 + $0x18] sm:$0xff]  ;;  %v1475_v54 = vld [vmem:[%s1126_s28 + $0x8] sm:$0xff]  ;;  %vm820_vm12 = vcmp.eq.f32.partialorder %v1133_v0, 12.0 }
 0x4a5   : > { %v788_v7 = vsel %vm785_vm9, 1, %v1081_v6  ;;  %v1472_v27 = vld [vmem:[%s1126_s28] sm:$0xff]  ;;  %v823_v38 = vsel %vm820_vm12, 1, %v1081_v6 }
 0x4a6   : > { %v789_v21 = vperm.slane %v788_v7, 0  ;;  %v790_v22 = vperm.slane %v788_v7, 1 }
 0x4a8   : > { %vm1477_vm10 = vcmp.eq.s32.totalorder %v789_v21, 1  ;;  %vm1481_vm11 = vcmp.eq.s32.totalorder %v790_v22, 1 }
 0x4a9   : > { %v869_v53 = vsel %vm1477_vm10, %v1460_v23, 1e+30  ;;  %v870_v56 = vsel %vm1481_vm11, %v1463_v24, 1e+30  ;;  %v834_v29 = vsel %vm1477_vm10, %v1466_v25, 1e+30 }
 0x4aa   : > { %v871_v55 = vmin.f32 %v869_v53, %v870_v56  ;;  %v835_v30 = vsel %vm1481_vm11, %v1469_v26, 1e+30  ;;  %v793_v31 = vsel %vm1477_vm10, %v1472_v27, 1e+30  ;;  %v794_v32 = vsel %vm1481_vm11, %v1475_v54, 1e+30 }
 0x4ab   : > { %v836_v58 = vmin.f32 %v834_v29, %v835_v30  ;;  %v795_v33 = vmin.f32 %v793_v31, %v794_v32  ;;  %v874_v34 = vsel %vm1477_vm10, %v1460_v23, -1e+30  ;;  %v875_v35 = vsel %vm1481_vm11, %v1463_v24, -1e+30  ;;  %v861_v32 = vld [vmem:[%s1131_s5 + $0x10] sm:$0xff] }
 0x4ac   : > { %872 = vmin.xlane.f32.xlu2 %v871_v55  ;;  %v839_v39 = vsel %vm1477_vm10, %v1466_v25, -1e+30  ;;  %v840_v40 = vsel %vm1481_vm11, %v1469_v26, -1e+30  ;;  %v798_v41 = vsel %vm1477_vm10, %v1472_v27, -1e+30  ;;  %v876_v36 = vmax.f32 %v874_v34, %v875_v35 }
 0x4ad   : > { %837 = vmin.xlane.f32.xlu1 %v836_v58  ;;  %796 = vmin.xlane.f32.xlu0 %v795_v33  ;;  %v799_v43 = vsel %vm1481_vm11, %v1475_v54, -1e+30  ;;  %v841_v42 = vmax.f32 %v839_v39, %v840_v40  ;;  %v896_v55 = vld [vmem:[%s1131_s5 + $0x20] sm:$0xff]  ;;  %v822_v39 = vld [vmem:[%s1131_s5 + $0x8] sm:$0xff]  ;;  %v862_v40 = vld [vmem:[%s1131_s5 + $0x18] sm:$0xff] }
 0x4ae   : > { %v800_v37 = vmax.f32 %v798_v41, %v799_v43  ;;  %v821_v35 = vld [vmem:[%s1131_s5] sm:$0xff] }
 0x4b4   : > { %877 = vmax.xlane.f32.xlu2 %v876_v36  ;;  %v897_v36 = vld [vmem:[%s1131_s5 + $0x28] sm:$0xff] }
 0x4b5   : > { %842 = vmax.xlane.f32.xlu1 %v841_v42  ;;  %801 = vmax.xlane.f32.xlu0 %v800_v37 }
 0x4c9   : > { %825 = vperm.xlu0 %1034, %v823_v38  }
 0x51f   : > { %v873_v44 = vpop.xlane.xlu2 %872 }
 0x520   : > { %v838_v45 = vpop.xlane.xlu1 %837  ;;  %v797_v46 = vpop.xlane.xlu0 %796 }
 0x527   : > { %v878_v47 = vpop.xlane.xlu2 %877 }
 0x528   : > { %v879_v48 = vsub.f32 %v878_v47, %v873_v44  ;;  %v843_v49 = vpop.xlane.xlu1 %842  ;;  %v802_v8 = vpop.xlane.xlu0 %801 }
 0x529   : > { %v844_v1 = vsub.f32 %v843_v49, %v838_v45  ;;  %v803_v50 = vsub.f32 %v802_v8, %v797_v46 }
 0x52a   : > { %vm880_vm13 = vcmp.le.f32.partialorder %v879_v48, 0.0 }
 0x52b   : > { %v881_v51 = vsel %vm880_vm13, 1.0, %v879_v48  ;;  %vm845_vm14 = vcmp.le.f32.partialorder %v844_v1, 0.0  ;;  %vm804_vm15 = vcmp.le.f32.partialorder %v803_v50, 0.0  ;;  %v887_v10 = vsel %vm880_vm13, 0.0, %v873_v44 }
 0x52c   : > { %1035 = vrcp.f32 %v881_v51  ;;  %v846_v52 = vsel %vm845_vm14, 1.0, %v844_v1  ;;  %v805_v0 = vsel %vm804_vm15, 1.0, %v803_v50  ;;  %v852_v11 = vsel %vm845_vm14, 0.0, %v838_v45 }
 0x52d   : > { %1037 = vrcp.f32 %v846_v52  ;;  %v811_v14 = vsel %vm804_vm15, 0.0, %v797_v46  ;;  %v888_v17 = vsub.f32 %v1460_v23, %v887_v10  ;;  %v889_v18 = vsub.f32 %v1463_v24, %v887_v10 }
 0x52e   : > { %1039 = vrcp.f32 %v805_v0  ;;  %v853_v20 = vsub.f32 %v1466_v25, %v852_v11  ;;  %v854_v3 = vsub.f32 %v1469_v26, %v852_v11  ;;  %v812_v5 = vsub.f32 %v1472_v27, %v811_v14 }
 0x52f   : > { %v813_v22 = vsub.f32 %v1475_v54, %v811_v14 }
 0x532   : > { %v1036_v59 = vpop.eup %1035 }
 0x533   : > { %v1038_v60 = vpop.eup %1037  ;;  %v883_v61 = vmul.f32 %v1036_v59, %v881_v51 }
 0x534   : > { %v1040_v62 = vpop.eup %1039  ;;  %v848_v63 = vmul.f32 %v1038_v60, %v846_v52 }
 0x535   : > { %v884_v9 = vsub.f32 2.0, %v883_v61  ;;  %v807_v12 = vmul.f32 %v1040_v62, %v805_v0 }
 0x536   : > { %v849_v13 = vsub.f32 2.0, %v848_v63 }
 0x537   : > { %v885_v15 = vmul.f32 %v1036_v59, %v884_v9  ;;  %v808_v16 = vsub.f32 2.0, %v807_v12 }
 0x538   : > { %v850_v19 = vmul.f32 %v1038_v60, %v849_v13 }
 0x539   : > { %v886_v2 = vsel %vm880_vm13, 1.0, %v885_v15  ;;  %v809_v4 = vmul.f32 %v1040_v62, %v808_v16 }
 0x53a   : > { %v890_v6 = vmul.f32 %v888_v17, %v886_v2  ;;  %v891_v7 = vmul.f32 %v889_v18, %v886_v2  ;;  %v851_v21 = vsel %vm845_vm14, 1.0, %v850_v19 }
 0x53b   : > { %v855_v23 = vmul.f32 %v853_v20, %v851_v21  ;;  %v856_v24 = vmul.f32 %v854_v3, %v851_v21  ;;  %v810_v28 = vsel %vm804_vm15, 1.0, %v809_v4  ;;  %v826_v25 = vpop.permute.xlu0 %825 }
 0x53c   : > { %v892_v57 = vmax.f32 %v890_v6, 0.0  ;;  %v893_v26 = vmax.f32 %v891_v7, 0.0  ;;  %v814_v53 = vmul.f32 %v812_v5, %v810_v28  ;;  %v815_v56 = vmul.f32 %v813_v22, %v810_v28 }
 0x53d   : > { %v857_v27 = vmax.f32 %v855_v23, 0.0  ;;  %v858_v29 = vmax.f32 %v856_v24, 0.0  ;;  %vm827_vm0 = vcmp.eq.s32.totalorder %v826_v25, 1 }
 0x53e   : > { %v894_v54 = vmin.f32 %v892_v57, 1.0  ;;  %v816_v30 = vmax.f32 %v814_v53, 0.0  ;;  %v817_v31 = vmax.f32 %v815_v56, 0.0  ;;  %v895_v58 = vmin.f32 %v893_v26, 1.0 }
 0x53f   : > { %v859_v33 = vmin.f32 %v857_v27, 1.0  ;;  %v860_v34 = vmin.f32 %v858_v29, 1.0 }
 0x540   : > { %v818_v41 = vmin.f32 %v816_v30, 1.0  ;;  %v819_v43 = vmin.f32 %v817_v31, 1.0  ;;  %v898_v42 = vsel %vm827_vm0, %v894_v54, %v896_v55  ;;  %v899_v46 = vsel %vm827_vm0, %v895_v58, %v897_v36 }
 0x541   : > { %v863_v37 = vsel %vm827_vm0, %v859_v33, %v861_v32  ;;  %900 = vst [vmem:[%s1131_s5 + $0x20] sm:$0xff] %v898_v42  ;;  %v864_v45 = vsel %vm827_vm0, %v860_v34, %v862_v40 }
 0x542   : > { %v828_v38 = vsel %vm827_vm0, %v818_v41, %v821_v35  ;;  %v829_v44 = vsel %vm827_vm0, %v819_v43, %v822_v39  ;;  %865 = vst [vmem:[%s1131_s5 + $0x10] sm:$0xff] %v863_v37 }
 0x543   : > { %830 = vst [vmem:[%s1131_s5] sm:$0xff] %v828_v38 }
 0x544   : > { %831 = vst [vmem:[%s1131_s5 + $0x8] sm:$0xff] %v829_v44 }
 0x545   : > { %866 = vst [vmem:[%s1131_s5 + $0x18] sm:$0xff] %v864_v45 }
 0x546   : > { %901 = vst [vmem:[%s1131_s5 + $0x28] sm:$0xff] %v899_v46 }
 0x547 PF: > { %s22_s19 = sadd.s32 1, %s1061_s19  }
 0x548   : > { %p19_p11 = scmp.ge.s32.totalorder %s22_s19, 5  }
 0x54a   :  { %21 = sbr.rel (!%p19_p11) target bundleno = 7 (0x7), region = 94 }

</bundles_post_ra>
